<compile_context>
chip_gen: v7x
topology: tpu7x:2x2x1
jax: 0.10.0
libtpu: 0.0.40
codegen_flags: <defaults>
</compile_context>

<pallas_src>
import jax
import jax.numpy as jnp
from jax import lax
from jax.experimental import pallas as pl
from jax.experimental.pallas import tpu as pltpu

EPS = 1e-5  # nn.BatchNorm1d default


def _mlp_kernel(x_ref, w1_ref, w2_ref, w3_ref, vec_ref, o_ref):
    out_dim = o_ref.shape[1]

    def bn_relu(h, g, b):
        # Train-mode BatchNorm1d (biased variance) fused into scale+shift.
        mu = jnp.mean(h, axis=0, keepdims=True)
        c = h - mu                                   # reused for the variance
        var = jnp.mean(c * c, axis=0, keepdims=True)
        s = g * lax.rsqrt(var + EPS)                 # EUP rsqrt, free slot
        return jnp.maximum(c * s + b, 0.0)           # 2 VPU ops per element

    # Layer 1: Linear -> BatchNorm1d -> ReLU  (pre-BN bias dropped: no-op)
    h = jnp.dot(x_ref[...].astype(jnp.bfloat16), w1_ref[...],
                preferred_element_type=jnp.float32)
    h = bn_relu(h, vec_ref[0:1, :], vec_ref[1:2, :])

    # Layer 2: Linear -> BatchNorm1d -> ReLU  (pre-BN bias dropped: no-op)
    h = jnp.dot(h.astype(jnp.bfloat16), w2_ref[...],
                preferred_element_type=jnp.float32)
    h = bn_relu(h, vec_ref[2:3, :], vec_ref[3:4, :])

    # Layer 3: Linear (+ b3), single store of the output tile.
    out = jnp.dot(h.astype(jnp.bfloat16), w3_ref[...],
                  preferred_element_type=jnp.float32)
    o_ref[...] = (out + vec_ref[4:5, :out_dim]).astype(o_ref.dtype)


def _full_spec(shape):
    nd = len(shape)
    return pl.BlockSpec(shape, lambda i, _nd=nd: (0,) * _nd)


def prepare_params(params):
    """One-time parameter prep (pad/cast/pack). Keep out of the hot path."""
    w1, b1, g1, be1, w2, b2, g2, be2, w3, b3 = params
    f, hidden = w1.shape
    out_dim = w3.shape[1]
    k_pad = ((f + 127) // 128) * 128

    # Zero-pad w1's K dim (100 -> 128) so the first matmul is lane-dense;
    # the zero rows contribute nothing.  Store all weights as bf16.
    w1_p = jnp.pad(w1, ((0, k_pad - f), (0, 0))).astype(jnp.bfloat16)
    w2_p = w2.astype(jnp.bfloat16)
    w3_p = w3.astype(jnp.bfloat16)

    # Pack the small per-feature vectors into one (8, hidden) f32 slab:
    # rows 0..3 = g1, be1, g2, be2; row 4[:out_dim] = b3.  b1/b2 are dropped
    # (a bias added immediately before BatchNorm is cancelled by the mean).
    vecs = jnp.zeros((8, hidden), jnp.float32)
    vecs = vecs.at[0].set(g1)
    vecs = vecs.at[1].set(be1)
    vecs = vecs.at[2].set(g2)
    vecs = vecs.at[3].set(be2)
    vecs = vecs.at[4, :out_dim].set(b3)
    return (w1_p, w2_p, w3_p, vecs)


def mlp_backbone(x, prepared):
    """x: (N, in_dim) f32.  prepared = prepare_params(raw_params)."""
    w1_p, w2_p, w3_p, vecs = prepared
    n, f = x.shape
    k_pad, hidden = w1_p.shape
    out_dim = w3_p.shape[1]

    # Only per-call prep: tiny x pad (N x in_dim -> N x 128, ~16 KB).
    x_p = jnp.pad(x, ((0, 0), (0, k_pad - f)))

    ins = (x_p, w1_p, w2_p, w3_p, vecs)

    flops = 2 * n * (k_pad * hidden + hidden * hidden + hidden * out_dim)
    bytes_accessed = (x_p.size * 4 + w1_p.size * 2 + w2_p.size * 2
                      + w3_p.size * 2 + vecs.size * 4 + n * out_dim * 4)

    return pl.pallas_call(
        _mlp_kernel,
        out_shape=jax.ShapeDtypeStruct((n, out_dim), x.dtype),
        grid_spec=pltpu.PrefetchScalarGridSpec(
            num_scalar_prefetch=0,
            grid=(1,),
            in_specs=[_full_spec(a.shape) for a in ins],
            out_specs=_full_spec((n, out_dim)),
        ),
        compiler_params=pltpu.CompilerParams(
            dimension_semantics=("arbitrary",)),
        cost_estimate=pl.CostEstimate(
            flops=flops, transcendentals=2 * hidden,
            bytes_accessed=bytes_accessed),
    )(*ins)


if __name__ == "__main__":
    key = jax.random.PRNGKey(0)
    ks = jax.random.split(key, 4)
    IN, HID, OUT, N = 100, 512, 256, 32

    def linear_init(k, fan_in, fan_out):
        # Matches torch.nn.Linear default: U(-1/sqrt(fan_in), 1/sqrt(fan_in)).
        bound = 1.0 / jnp.sqrt(jnp.float32(fan_in))
        kw, kb = jax.random.split(k)
        w = jax.random.uniform(kw, (fan_in, fan_out), jnp.float32, -bound, bound)
        b = jax.random.uniform(kb, (fan_out,), jnp.float32, -bound, bound)
        return w, b

    w1, b1 = linear_init(ks[0], IN, HID)
    w2, b2 = linear_init(ks[1], HID, HID)
    w3, b3 = linear_init(ks[2], HID, OUT)
    g1 = jnp.ones((HID,), jnp.float32); be1 = jnp.zeros((HID,), jnp.float32)
    g2 = jnp.ones((HID,), jnp.float32); be2 = jnp.zeros((HID,), jnp.float32)

    x = jax.random.normal(ks[3], (N, IN), dtype=jnp.float32)

    raw_params = (w1, b1, g1, be1, w2, b2, g2, be2, w3, b3)
    prepared = jax.tree_util.tree_map(jax.block_until_ready,
                                      prepare_params(raw_params))

    y = jax.block_until_ready(mlp_backbone(x, prepared))

    # Pure-JAX f32 reference (train-mode BatchNorm forward, matching PyTorch).
    def ref(xv):
        def bn(h, g, b):
            mu = h.mean(0, keepdims=True)
            var = jnp.square(h - mu).mean(0, keepdims=True)
            return g * (h - mu) / jnp.sqrt(var + EPS) + b
        h = xv @ w1 + b1
        h = jnp.maximum(bn(h, g1, be1), 0.0)
        h = h @ w2 + b2
        h = jnp.maximum(bn(h, g2, be2), 0.0)
        return h @ w3 + b3

    y_ref = ref(x)
    assert y.shape == (N, OUT) and y.dtype == jnp.float32
    assert bool(jnp.all(jnp.isfinite(y)))
    err = float(jnp.max(jnp.abs(y - y_ref)))
    assert err < 5e-2, f"max abs error vs f32 reference: {err}"
    print("KERNEL_OK")
</pallas_src>

<mosaic_0001>
module attributes {stable_mosaic.version = 11 : i64} {
  func.func @_mlp_kernel(%arg0: i32, %arg1: memref<32x128xf32, #tpu.memory_space<vmem>>, %arg2: memref<128x512xbf16, #tpu.memory_space<vmem>>, %arg3: memref<512x512xbf16, #tpu.memory_space<vmem>>, %arg4: memref<512x256xbf16, #tpu.memory_space<vmem>>, %arg5: memref<8x512xf32, #tpu.memory_space<vmem>>, %arg6: memref<32x256xf32, #tpu.memory_space<vmem>>) attributes {dimension_semantics = [#tpu.dimension_semantics<arbitrary>], iteration_bounds = array<i64: 1>, scalar_prefetch = 0 : i64, scratch_operands = 0 : i64, tpu.core_type = #tpu.core_type<tc>, window_params = [{pipeline_mode = #tpu.pipeline_mode<synchronous>, transform_indices = @transform_0, window_bounds = array<i64: 32, 128>}, {pipeline_mode = #tpu.pipeline_mode<synchronous>, transform_indices = @transform_1, window_bounds = array<i64: 128, 512>}, {pipeline_mode = #tpu.pipeline_mode<synchronous>, transform_indices = @transform_2, window_bounds = array<i64: 512, 512>}, {pipeline_mode = #tpu.pipeline_mode<synchronous>, transform_indices = @transform_3, window_bounds = array<i64: 512, 256>}, {pipeline_mode = #tpu.pipeline_mode<synchronous>, transform_indices = @transform_4, window_bounds = array<i64: 8, 512>}, {pipeline_mode = #tpu.pipeline_mode<synchronous>, transform_indices = @transform_5, window_bounds = array<i64: 32, 256>}]} {
    %c0 = arith.constant 0 : index
    %c0_0 = arith.constant 0 : index
    %0 = vector.load %arg1[%c0, %c0_0] : memref<32x128xf32, #tpu.memory_space<vmem>>, vector<32x128xf32>
    %1 = arith.truncf %0 : vector<32x128xf32> to vector<32x128xbf16>
    %c0_1 = arith.constant 0 : index
    %c0_2 = arith.constant 0 : index
    %2 = vector.load %arg2[%c0_1, %c0_2] : memref<128x512xbf16, #tpu.memory_space<vmem>>, vector<128x512xbf16>
    %cst = arith.constant dense<0.000000e+00> : vector<32x512xf32>
    %3 = tpu.matmul %1, %2, %cst {dimension_numbers = #tpu.dot_dimension_numbers<[1], [0], [0], [1], [0, 0, 1, 1], [], []>} : vector<32x128xbf16>, vector<128x512xbf16>, vector<32x512xf32> -> vector<32x512xf32>
    %c0_3 = arith.constant 0 : index
    %c0_4 = arith.constant 0 : index
    %4 = vector.load %arg5[%c0_3, %c0_4] : memref<8x512xf32, #tpu.memory_space<vmem>>, vector<1x512xf32>
    %c1 = arith.constant 1 : index
    %c0_5 = arith.constant 0 : index
    %5 = vector.load %arg5[%c1, %c0_5] : memref<8x512xf32, #tpu.memory_space<vmem>>, vector<1x512xf32>
    %cst_6 = arith.constant dense<0.000000e+00> : vector<512xf32>
    %6 = vector.multi_reduction <add>, %3, %cst_6 [0] : vector<32x512xf32> to vector<512xf32>
    %7 = vector.shape_cast %6 : vector<512xf32> to vector<1x512xf32>
    %cst_7 = arith.constant 3.200000e+01 : f32
    %8 = vector.broadcast %cst_7 : f32 to vector<1x512xf32>
    %9 = arith.divf %7, %8 : vector<1x512xf32>
    %10 = vector.broadcast %9 : vector<1x512xf32> to vector<32x512xf32>
    %11 = arith.subf %3, %10 : vector<32x512xf32>
    %12 = arith.mulf %11, %11 : vector<32x512xf32>
    %cst_8 = arith.constant dense<0.000000e+00> : vector<512xf32>
    %13 = vector.multi_reduction <add>, %12, %cst_8 [0] : vector<32x512xf32> to vector<512xf32>
    %14 = vector.shape_cast %13 : vector<512xf32> to vector<1x512xf32>
    %cst_9 = arith.constant 3.200000e+01 : f32
    %15 = vector.broadcast %cst_9 : f32 to vector<1x512xf32>
    %16 = arith.divf %14, %15 : vector<1x512xf32>
    %cst_10 = arith.constant 9.99999974E-6 : f32
    %17 = vector.broadcast %cst_10 : f32 to vector<1x512xf32>
    %18 = arith.addf %16, %17 : vector<1x512xf32>
    %19 = math.rsqrt %18 : vector<1x512xf32>
    %20 = arith.mulf %4, %19 : vector<1x512xf32>
    %21 = vector.broadcast %20 : vector<1x512xf32> to vector<32x512xf32>
    %22 = arith.mulf %11, %21 : vector<32x512xf32>
    %23 = vector.broadcast %5 : vector<1x512xf32> to vector<32x512xf32>
    %24 = arith.addf %22, %23 : vector<32x512xf32>
    %cst_11 = arith.constant 0.000000e+00 : f32
    %25 = vector.broadcast %cst_11 : f32 to vector<32x512xf32>
    %26 = arith.maximumf %24, %25 : vector<32x512xf32>
    %27 = arith.truncf %26 : vector<32x512xf32> to vector<32x512xbf16>
    %c0_12 = arith.constant 0 : index
    %c0_13 = arith.constant 0 : index
    %28 = vector.load %arg3[%c0_12, %c0_13] : memref<512x512xbf16, #tpu.memory_space<vmem>>, vector<512x512xbf16>
    %cst_14 = arith.constant dense<0.000000e+00> : vector<32x512xf32>
    %29 = tpu.matmul %27, %28, %cst_14 {dimension_numbers = #tpu.dot_dimension_numbers<[1], [0], [0], [1], [0, 0, 1, 1], [], []>} : vector<32x512xbf16>, vector<512x512xbf16>, vector<32x512xf32> -> vector<32x512xf32>
    %c2 = arith.constant 2 : index
    %c0_15 = arith.constant 0 : index
    %30 = vector.load %arg5[%c2, %c0_15] : memref<8x512xf32, #tpu.memory_space<vmem>>, vector<1x512xf32>
    %c3 = arith.constant 3 : index
    %c0_16 = arith.constant 0 : index
    %31 = vector.load %arg5[%c3, %c0_16] : memref<8x512xf32, #tpu.memory_space<vmem>>, vector<1x512xf32>
    %cst_17 = arith.constant dense<0.000000e+00> : vector<512xf32>
    %32 = vector.multi_reduction <add>, %29, %cst_17 [0] : vector<32x512xf32> to vector<512xf32>
    %33 = vector.shape_cast %32 : vector<512xf32> to vector<1x512xf32>
    %cst_18 = arith.constant 3.200000e+01 : f32
    %34 = vector.broadcast %cst_18 : f32 to vector<1x512xf32>
    %35 = arith.divf %33, %34 : vector<1x512xf32>
    %36 = vector.broadcast %35 : vector<1x512xf32> to vector<32x512xf32>
    %37 = arith.subf %29, %36 : vector<32x512xf32>
    %38 = arith.mulf %37, %37 : vector<32x512xf32>
    %cst_19 = arith.constant dense<0.000000e+00> : vector<512xf32>
    %39 = vector.multi_reduction <add>, %38, %cst_19 [0] : vector<32x512xf32> to vector<512xf32>
    %40 = vector.shape_cast %39 : vector<512xf32> to vector<1x512xf32>
    %cst_20 = arith.constant 3.200000e+01 : f32
    %41 = vector.broadcast %cst_20 : f32 to vector<1x512xf32>
    %42 = arith.divf %40, %41 : vector<1x512xf32>
    %cst_21 = arith.constant 9.99999974E-6 : f32
    %43 = vector.broadcast %cst_21 : f32 to vector<1x512xf32>
    %44 = arith.addf %42, %43 : vector<1x512xf32>
    %45 = math.rsqrt %44 : vector<1x512xf32>
    %46 = arith.mulf %30, %45 : vector<1x512xf32>
    %47 = vector.broadcast %46 : vector<1x512xf32> to vector<32x512xf32>
    %48 = arith.mulf %37, %47 : vector<32x512xf32>
    %49 = vector.broadcast %31 : vector<1x512xf32> to vector<32x512xf32>
    %50 = arith.addf %48, %49 : vector<32x512xf32>
    %cst_22 = arith.constant 0.000000e+00 : f32
    %51 = vector.broadcast %cst_22 : f32 to vector<32x512xf32>
    %52 = arith.maximumf %50, %51 : vector<32x512xf32>
    %53 = arith.truncf %52 : vector<32x512xf32> to vector<32x512xbf16>
    %c0_23 = arith.constant 0 : index
    %c0_24 = arith.constant 0 : index
    %54 = vector.load %arg4[%c0_23, %c0_24] : memref<512x256xbf16, #tpu.memory_space<vmem>>, vector<512x256xbf16>
    %cst_25 = arith.constant dense<0.000000e+00> : vector<32x256xf32>
    %55 = tpu.matmul %53, %54, %cst_25 {dimension_numbers = #tpu.dot_dimension_numbers<[1], [0], [0], [1], [0, 0, 1, 1], [], []>} : vector<32x512xbf16>, vector<512x256xbf16>, vector<32x256xf32> -> vector<32x256xf32>
    %c4 = arith.constant 4 : index
    %c0_26 = arith.constant 0 : index
    %56 = vector.load %arg5[%c4, %c0_26] : memref<8x512xf32, #tpu.memory_space<vmem>>, vector<1x256xf32>
    %57 = vector.broadcast %56 : vector<1x256xf32> to vector<32x256xf32>
    %58 = arith.addf %55, %57 : vector<32x256xf32>
    %c0_27 = arith.constant 0 : index
    %c0_28 = arith.constant 0 : index
    %59 = vector.load %arg6[%c0_27, %c0_28] : memref<32x256xf32, #tpu.memory_space<vmem>>, vector<32x256xf32>
    tpu.vector_store %arg6[%c0_27, %c0_28], %58 {strides = array<i32>} : memref<32x256xf32, #tpu.memory_space<vmem>>, vector<32x256xf32>,
    return
  }
  func.func @transform_0(%arg0: i32) -> (i32, i32) {
    %c0_i32 = arith.constant 0 : i32
    %c0_i32_0 = arith.constant 0 : i32
    %c0_i32_1 = arith.constant 0 : i32
    return %c0_i32, %c0_i32_0 : i32, i32
  }
  func.func @transform_1(%arg0: i32) -> (i32, i32) {
    %c0_i32 = arith.constant 0 : i32
    %c0_i32_0 = arith.constant 0 : i32
    %c0_i32_1 = arith.constant 0 : i32
    return %c0_i32, %c0_i32_0 : i32, i32
  }
  func.func @transform_2(%arg0: i32) -> (i32, i32) {
    %c0_i32 = arith.constant 0 : i32
    %c0_i32_0 = arith.constant 0 : i32
    %c0_i32_1 = arith.constant 0 : i32
    return %c0_i32, %c0_i32_0 : i32, i32
  }
  func.func @transform_3(%arg0: i32) -> (i32, i32) {
    %c0_i32 = arith.constant 0 : i32
    %c0_i32_0 = arith.constant 0 : i32
    %c0_i32_1 = arith.constant 0 : i32
    return %c0_i32, %c0_i32_0 : i32, i32
  }
  func.func @transform_4(%arg0: i32) -> (i32, i32) {
    %c0_i32 = arith.constant 0 : i32
    %c0_i32_0 = arith.constant 0 : i32
    %c0_i32_1 = arith.constant 0 : i32
    return %c0_i32, %c0_i32_0 : i32, i32
  }
  func.func @transform_5(%arg0: i32) -> (i32, i32) {
    %c0_i32 = arith.constant 0 : i32
    %c0_i32_0 = arith.constant 0 : i32
    %c0_i32_1 = arith.constant 0 : i32
    return %c0_i32, %c0_i32_0 : i32, i32
  }
}

</mosaic_0001>

<bundles_post_ra>
// kernel: tpu_custom_call.1
= control target key start
LH: loop header
LB: loop body
LE: loop exit
PB: predicated region body
PF: predicated region fallthrough
CT: control target
= control target key end

     0   :  { %10 = vsyncpa [#allocation3], 0  ;;  %s3539_s0 = inlined_call_operand.hbm [shape: f32[32,128], index: 0, kind: input, shape index: {}]   ;;  %s3540_s1 = inlined_call_operand.hbm [shape: bf16[128,512], index: 1, kind: input, shape index: {}]   ;;  %s3541_s2 = inlined_call_operand.hbm [shape: bf16[512,512], index: 2, kind: input, shape index: {}]   ;;  %s3542_s3 = inlined_call_operand.hbm [shape: bf16[512,256], index: 3, kind: input, shape index: {}]   ;;  %s3543_s4 = inlined_call_operand.hbm [shape: f32[8,512], index: 4, kind: input, shape index: {}]   ;;  %s3544_s5 = inlined_call_operand.hbm [shape: f32[32,256], index: 5, kind: output, shape index: {}]  }
   0x1   :  { %11 = vsyncpa [#allocation6], 0 }
   0x2   :  { %12 = vsyncpa [#allocation9], 0 }
   0x3   :  { %13 = vsyncpa [#allocation4], 0  ;;  %s3166_s18 = smov [#allocation5]   ;;  %s3026_s22 = scalar_lea.hbm %s3540_s1, 4096 }
   0x4   :  { %s31_s19 = sshll.u32 %s3166_s18, 4  ;;  %p3027_p0 = scmp.ne.s32.totalorder %s3540_s1, %s3026_s22  ;;  %s32_s19 = int_to_ptr.vmem [resolvable:$true] %s31_s19 }
   0x5   :  { %p3030_p1 = scmp.lt.u32.totalorder %s3026_s22, %s3540_s1 }
   0x7   :  { %p3032_p2 = pnand %p3030_p1, %p3027_p0 }
   0x9   :  { %3035 = shalt.err (!%p3032_p2)
}
   0xa   :  { %s3036_s27 = scalar_lea.vmem %s32_s19, 4096  ;;  %p3041_p4 = scmp.lt.s32.totalorder %s32_s19, %s32_s19 }
   0xb   :  { %p3037_p3 = scmp.ne.s32.totalorder %s32_s19, %s3036_s27  ;;  %p3042_p5 = scmp.lt.s32.totalorder %s3036_s27, %s3036_s27 }
   0xd   :  { %p3043_p6 = por %p3042_p5, %p3041_p4 }
   0xf   :  { %p3044_p7 = pnand %p3043_p6, %p3037_p3 }
  0x11   :  { %3047 = shalt.err (!%p3044_p7)
}
  0x12   :  { %s3167_s28 = smov 256   ;;  %s3168_s29 = smov 16  }
  0x13   :  { %37 = dma.hbm_to_vmem [thread:$0]  %s3540_s1, 4096, %s32_s19, [#allocation6], %s3167_s28, %s3167_s28, %s3168_s29  }
  0x14   :  { %s3169_s7 = smov [#allocation8]   ;;  %s3170_s9 = smov [#allocation2]  }
  0x15   :  { %s55_s8 = sshll.u32 %s3169_s7, 4  ;;  %s19_s10 = sshll.u32 %s3170_s9, 4  ;;  %s56_s8 = int_to_ptr.vmem [resolvable:$true] %s55_s8  ;;  %s20_s10 = int_to_ptr.vmem [resolvable:$true] %s19_s10 }
  0x16   :  { %s3048_s13 = scalar_lea.hbm %s3542_s3, 8192 }
  0x17   :  { %p3049_p8 = scmp.ne.s32.totalorder %s3542_s3, %s3048_s13  ;;  %p3052_p9 = scmp.lt.u32.totalorder %s3048_s13, %s3542_s3 }
  0x19   :  { %p3054_p10 = pnand %p3052_p9, %p3049_p8 }
  0x1b   :  { %3057 = shalt.err (!%p3054_p10)
}
  0x1c   :  { %s3058_s1 = scalar_lea.vmem %s56_s8, 8192  ;;  %p3063_p12 = scmp.lt.s32.totalorder %s56_s8, %s56_s8 }
  0x1d   :  { %p3059_p11 = scmp.ne.s32.totalorder %s56_s8, %s3058_s1  ;;  %p3064_p13 = scmp.lt.s32.totalorder %s3058_s1, %s3058_s1 }
  0x1f   :  { %p3065_p0 = por %p3064_p13, %p3063_p12 }
  0x21   :  { %p3066_p1 = pnand %p3065_p0, %p3059_p11 }
  0x23   :  { %3069 = shalt.err (!%p3066_p1)
}
  0x24   :  { %s3171_s18 = smov 128   ;;  %s3172_s19 = smov 8  }
  0x25   :  { %61 = dma.hbm_to_vmem [thread:$0]  %s3542_s3, 8192, %s56_s8, [#allocation9], %s3171_s18, %s3171_s18, %s3172_s19  }
  0x26   :  { %s3070_s24 = scalar_lea.hbm %s3539_s0, 512 }
  0x27   :  { %p3071_p2 = scmp.ne.s32.totalorder %s3539_s0, %s3070_s24  ;;  %p3074_p3 = scmp.lt.u32.totalorder %s3070_s24, %s3539_s0 }
  0x29   :  { %p3076_p4 = pnand %p3074_p3, %p3071_p2 }
  0x2b   :  { %3079 = shalt.err (!%p3076_p4)
}
  0x2c   :  { %s3080_s6 = scalar_lea.vmem %s20_s10, 512  ;;  %p3085_p6 = scmp.lt.s32.totalorder %s20_s10, %s20_s10 }
  0x2d   :  { %p3081_p5 = scmp.ne.s32.totalorder %s20_s10, %s3080_s6  ;;  %p3086_p7 = scmp.lt.s32.totalorder %s3080_s6, %s3080_s6 }
  0x2f   :  { %p3087_p8 = por %p3086_p7, %p3085_p6 }
  0x31   :  { %p3088_p9 = pnand %p3087_p8, %p3081_p5 }
  0x33   :  { %3091 = shalt.err (!%p3088_p9)
}
  0x34   :  { %25 = dma.hbm_to_vmem [thread:$0]  %s3539_s0, 512, %s20_s10, [#allocation3], %s3171_s18, %s3171_s18, %s3172_s19  }
  0x35   :  { %s3173_s8 = smov [#allocation7]   ;;  %s3174_s11 = smov [#allocation10]  }
  0x36   :  { %s43_s9 = sshll.u32 %s3173_s8, 4  ;;  %s68_s12 = sshll.u32 %s3174_s11, 4  ;;  %s44_s9 = int_to_ptr.vmem [resolvable:$true] %s43_s9  ;;  %s69_s12 = int_to_ptr.vmem [resolvable:$true] %s68_s12 }
  0x37   :  { %s3092_s15 = scalar_lea.hbm %s3541_s2, 16384 }
  0x38   :  { %p3093_p10 = scmp.ne.s32.totalorder %s3541_s2, %s3092_s15  ;;  %p3096_p11 = scmp.lt.u32.totalorder %s3092_s15, %s3541_s2 }
  0x3a   :  { %p3098_p12 = pnand %p3096_p11, %p3093_p10 }
  0x3c   :  { %3101 = shalt.err (!%p3098_p12)
}
  0x3d   :  { %s3102_s0 = scalar_lea.vmem %s44_s9, 16384  ;;  %p3107_p0 = scmp.lt.s32.totalorder %s44_s9, %s44_s9 }
  0x3e   :  { %p3103_p13 = scmp.ne.s32.totalorder %s44_s9, %s3102_s0  ;;  %p3108_p1 = scmp.lt.s32.totalorder %s3102_s0, %s3102_s0 }
  0x40   :  { %p3109_p2 = por %p3108_p1, %p3107_p0 }
  0x42   :  { %p3110_p3 = pnand %p3109_p2, %p3103_p13 }
  0x44   :  { %3113 = shalt.err (!%p3110_p3)
}
  0x45   :  { %49 = dma.hbm_to_vmem [thread:$0]  %s3541_s2, 16384, %s44_s9, [#allocation6], %s3167_s28, %s3167_s28, %s3168_s29  }
  0x46   :  { %s3114_s22 = scalar_lea.hbm %s3543_s4, 512 }
  0x47   :  { %p3115_p4 = scmp.ne.s32.totalorder %s3543_s4, %s3114_s22  ;;  %p3118_p5 = scmp.lt.u32.totalorder %s3114_s22, %s3543_s4 }
  0x49   :  { %p3120_p6 = pnand %p3118_p5, %p3115_p4 }
  0x4b   :  { %3123 = shalt.err (!%p3120_p6)
}
  0x4c   :  { %s3124_s27 = scalar_lea.vmem %s69_s12, 512  ;;  %p3129_p8 = scmp.lt.s32.totalorder %s69_s12, %s69_s12 }
  0x4d   :  { %p3125_p7 = scmp.ne.s32.totalorder %s69_s12, %s3124_s27  ;;  %p3130_p9 = scmp.lt.s32.totalorder %s3124_s27, %s3124_s27 }
  0x4f   :  { %p3131_p10 = por %p3130_p9, %p3129_p8 }
  0x51   :  { %p3132_p11 = pnand %p3131_p10, %p3125_p7 }
  0x53   :  { %3135 = shalt.err (!%p3132_p11)
}
  0x54   :  { %71 = dma.hbm_to_vmem [thread:$0]  %s3543_s4, 512, %s69_s12, [#allocation9]  }
  0x55   :  { %3158 = dma.done.wait [#allocation3], 512  }
  0x56   :  { %3159 = vsyncadd [#allocation3], 4294966784 }
  0x57   :  { %3160 = dma.done.wait [#allocation6], 20480  }
  0x58   :  { %3161 = vsyncadd [#allocation6], 4294946816 }
  0x59   :  { %3162 = dma.done.wait [#allocation9], 8704  }
  0x5a   :  { %3163 = vsyncadd [#allocation9], 4294958592  ;;  %v3175_v0 = vmov 0   ;;  %v2674_v1 = vld [vmem:[#allocation5 + $0x4] ss:$16 sps:$4 sm:$0xff]   ;;  %v89_v34 = vld [vmem:[#allocation2 + $0x8] sm:$0xff] }
  0x5b   :  { %318 = vmatprep.mubr.bf16.mxu0 %v3175_v0  ;;  %371 = vmatprep.mubr.bf16.mxu1 %v3175_v0  ;;  %v2676_v2 = vld [vmem:[#allocation5 + $0xc] ss:$16 sps:$4 sm:$0xff]   ;;  %v2678_v3 = vld [vmem:[#allocation5] ss:$16 sps:$4 sm:$0xff]   ;;  %v2679_v4 = vld [vmem:[#allocation5 + $0x8] ss:$16 sps:$4 sm:$0xff]  }
  0x5c   :  { %286 = vmatprep.subr.bf16.mxu0 %v2674_v1  ;;  %339 = vmatprep.subr.bf16.mxu1 %v2676_v2  ;;  %v2680_v5 = vld [vmem:[#allocation5 + $0x24] ss:$16 sps:$4 sm:$0xff]   ;;  %v2682_v6 = vld [vmem:[#allocation5 + $0x2c] ss:$16 sps:$4 sm:$0xff]   ;;  %v2684_v7 = vld [vmem:[#allocation5 + $0x20] ss:$16 sps:$4 sm:$0xff]  }
  0x5d   :  { %287 = vmatpush1.bf16.msra.mxu0 %v2678_v3  ;;  %340 = vmatpush1.bf16.msra.mxu1 %v2679_v4  ;;  %v2685_v8 = vld [vmem:[#allocation5 + $0x28] ss:$16 sps:$4 sm:$0xff]   ;;  %v2686_v9 = vld [vmem:[#allocation5 + $0x44] ss:$16 sps:$4 sm:$0xff]   ;;  %v2688_v10 = vld [vmem:[#allocation5 + $0x4c] ss:$16 sps:$4 sm:$0xff]  }
  0x5e   :  { %288 = vmatprep.subr.bf16.mxu0 %v2680_v5  ;;  %341 = vmatprep.subr.bf16.mxu1 %v2682_v6  ;;  %v2690_v11 = vld [vmem:[#allocation5 + $0x40] ss:$16 sps:$4 sm:$0xff]   ;;  %v2691_v12 = vld [vmem:[#allocation5 + $0x48] ss:$16 sps:$4 sm:$0xff]   ;;  %v2692_v13 = vld [vmem:[#allocation5 + $0x64] ss:$16 sps:$4 sm:$0xff]  }
  0x5f   :  { %v2694_v14 = vld [vmem:[#allocation5 + $0x6c] ss:$16 sps:$4 sm:$0xff]   ;;  %v2696_v15 = vld [vmem:[#allocation5 + $0x60] ss:$16 sps:$4 sm:$0xff]   ;;  %v2697_v16 = vld [vmem:[#allocation5 + $0x68] ss:$16 sps:$4 sm:$0xff]  }
  0x60   :  { %v2698_v17 = vld [vmem:[#allocation5 + $0x84] ss:$16 sps:$4 sm:$0xff]   ;;  %v2700_v18 = vld [vmem:[#allocation5 + $0x8c] ss:$16 sps:$4 sm:$0xff]   ;;  %v2702_v19 = vld [vmem:[#allocation5 + $0x80] ss:$16 sps:$4 sm:$0xff]  }
  0x61   :  { %289 = vmatpush1.bf16.msra.mxu0 %v2684_v7  ;;  %342 = vmatpush1.bf16.msra.mxu1 %v2685_v8  ;;  %v2703_v20 = vld [vmem:[#allocation5 + $0x88] ss:$16 sps:$4 sm:$0xff]   ;;  %v2704_v21 = vld [vmem:[#allocation5 + $0xa4] ss:$16 sps:$4 sm:$0xff]   ;;  %v2706_v22 = vld [vmem:[#allocation5 + $0xac] ss:$16 sps:$4 sm:$0xff]  }
  0x62   :  { %290 = vmatprep.subr.bf16.mxu0 %v2686_v9  ;;  %343 = vmatprep.subr.bf16.mxu1 %v2688_v10  ;;  %v2708_v23 = vld [vmem:[#allocation5 + $0xa0] ss:$16 sps:$4 sm:$0xff]   ;;  %v2709_v24 = vld [vmem:[#allocation5 + $0xa8] ss:$16 sps:$4 sm:$0xff]   ;;  %v2710_v25 = vld [vmem:[#allocation5 + $0xc4] ss:$16 sps:$4 sm:$0xff]  }
  0x63   :  { %v2712_v26 = vld [vmem:[#allocation5 + $0xcc] ss:$16 sps:$4 sm:$0xff]   ;;  %v2714_v27 = vld [vmem:[#allocation5 + $0xc0] ss:$16 sps:$4 sm:$0xff]   ;;  %v2715_v28 = vld [vmem:[#allocation5 + $0xc8] ss:$16 sps:$4 sm:$0xff]  }
  0x64   :  { %v2716_v29 = vld [vmem:[#allocation5 + $0xe4] ss:$16 sps:$4 sm:$0xff]   ;;  %v2718_v30 = vld [vmem:[#allocation5 + $0xec] ss:$16 sps:$4 sm:$0xff]   ;;  %v2720_v31 = vld [vmem:[#allocation5 + $0xe0] ss:$16 sps:$4 sm:$0xff]  }
  0x65   :  { %291 = vmatpush1.bf16.msra.mxu0 %v2690_v11  ;;  %344 = vmatpush1.bf16.msra.mxu1 %v2691_v12  ;;  %v2721_v32 = vld [vmem:[#allocation5 + $0xe8] ss:$16 sps:$4 sm:$0xff]   ;;  %v88_v33 = vld [vmem:[#allocation2] sm:$0xff]  ;;  %v90_v36 = vld [vmem:[#allocation2 + $0x10] sm:$0xff]  ;;  %s3177_s4 = smov [#allocation11]  }
  0x66   :  { %292 = vmatprep.subr.bf16.mxu0 %v2692_v13  ;;  %345 = vmatprep.subr.bf16.mxu1 %v2694_v14  ;;  %v92_v35 = vpack.c.bf16 %v89_v34, %v88_v33  ;;  %v91_v37 = vld [vmem:[#allocation2 + $0x18] sm:$0xff]  ;;  %v2724_v39 = vld [vmem:[#allocation7 + $0x4] ss:$16 sps:$4 sm:$0xff]   ;;  %v2722_v40 = vld [vmem:[#allocation7] ss:$16 sps:$4 sm:$0xff]   ;;  %s2392_s6 = sshll.u32 %s3177_s4, 4  ;;  %s2393_s6 = int_to_ptr.vmem [resolvable:$true] %s2392_s6 }
  0x67   :  { %v93_v38 = vpack.c.bf16 %v91_v37, %v90_v36  ;;  %v2727_v41 = vld [vmem:[#allocation7 + $0x204] ss:$16 sps:$4 sm:$0xff]   ;;  %v2725_v42 = vld [vmem:[#allocation7 + $0x200] ss:$16 sps:$4 sm:$0xff]   ;;  %s3136_s3 = scalar_lea.vmem %s2393_s6, 1024  ;;  %p3141_p13 = scmp.lt.s32.totalorder %s2393_s6, %s2393_s6 }
  0x68   :  { %v2730_v43 = vld [vmem:[#allocation7 + $0x24] ss:$16 sps:$4 sm:$0xff]   ;;  %v2728_v44 = vld [vmem:[#allocation7 + $0x20] ss:$16 sps:$4 sm:$0xff]   ;;  %p3137_p12 = scmp.ne.s32.totalorder %s2393_s6, %s3136_s3  ;;  %p3142_p0 = scmp.lt.s32.totalorder %s3136_s3, %s3136_s3 }
  0x69   :  { %293 = vmatpush1.bf16.msra.mxu0 %v2696_v15  ;;  %346 = vmatpush1.bf16.msra.mxu1 %v2697_v16  ;;  %v2733_v45 = vld [vmem:[#allocation7 + $0x224] ss:$16 sps:$4 sm:$0xff]   ;;  %v2731_v46 = vld [vmem:[#allocation7 + $0x220] ss:$16 sps:$4 sm:$0xff]  }
  0x6a   :  { %294 = vmatprep.subr.bf16.mxu0 %v2698_v17  ;;  %347 = vmatprep.subr.bf16.mxu1 %v2700_v18  ;;  %v2736_v47 = vld [vmem:[#allocation7 + $0x44] ss:$16 sps:$4 sm:$0xff]   ;;  %v2734_v48 = vld [vmem:[#allocation7 + $0x40] ss:$16 sps:$4 sm:$0xff]   ;;  %p3143_p1 = por %p3142_p0, %p3141_p13 }
  0x6b   :  { %v2739_v49 = vld [vmem:[#allocation7 + $0x244] ss:$16 sps:$4 sm:$0xff]   ;;  %v2737_v50 = vld [vmem:[#allocation7 + $0x240] ss:$16 sps:$4 sm:$0xff]  }
  0x6c   :  { %v2742_v51 = vld [vmem:[#allocation7 + $0x64] ss:$16 sps:$4 sm:$0xff]   ;;  %v2740_v52 = vld [vmem:[#allocation7 + $0x60] ss:$16 sps:$4 sm:$0xff]   ;;  %p3144_p2 = pnand %p3143_p1, %p3137_p12 }
  0x6d   :  { %295 = vmatpush1.bf16.msra.mxu0 %v2702_v19  ;;  %348 = vmatpush1.bf16.msra.mxu1 %v2703_v20  ;;  %v2745_v53 = vld [vmem:[#allocation7 + $0x264] ss:$16 sps:$4 sm:$0xff]   ;;  %v2743_v54 = vld [vmem:[#allocation7 + $0x260] ss:$16 sps:$4 sm:$0xff]  }
  0x6e   :  { %296 = vmatprep.subr.bf16.mxu0 %v2704_v21  ;;  %349 = vmatprep.subr.bf16.mxu1 %v2706_v22  ;;  %v2748_v55 = vld [vmem:[#allocation7 + $0x84] ss:$16 sps:$4 sm:$0xff]   ;;  %v2746_v56 = vld [vmem:[#allocation7 + $0x80] ss:$16 sps:$4 sm:$0xff]  }
  0x6f   :  { %v2751_v57 = vld [vmem:[#allocation7 + $0x284] ss:$16 sps:$4 sm:$0xff]   ;;  %v2749_v58 = vld [vmem:[#allocation7 + $0x280] ss:$16 sps:$4 sm:$0xff]  }
  0x70   :  { %v2754_v59 = vld [vmem:[#allocation7 + $0xa4] ss:$16 sps:$4 sm:$0xff]   ;;  %v2752_v60 = vld [vmem:[#allocation7 + $0xa0] ss:$16 sps:$4 sm:$0xff]  }
  0x71   :  { %297 = vmatpush1.bf16.msra.mxu0 %v2708_v23  ;;  %350 = vmatpush1.bf16.msra.mxu1 %v2709_v24  ;;  %v2757_v61 = vld [vmem:[#allocation7 + $0x2a4] ss:$16 sps:$4 sm:$0xff]   ;;  %v2755_v62 = vld [vmem:[#allocation7 + $0x2a0] ss:$16 sps:$4 sm:$0xff]  }
  0x72   :  { %298 = vmatprep.subr.bf16.mxu0 %v2710_v25  ;;  %351 = vmatprep.subr.bf16.mxu1 %v2712_v26  ;;  %v2760_v63 = vld [vmem:[#allocation7 + $0xc4] ss:$16 sps:$4 sm:$0xff]   ;;  %v2761_v2 = vld [vmem:[#allocation7 + $0x2c0] ss:$16 sps:$4 sm:$0xff]  }
  0x73   :  { %v2763_v1 = vld [vmem:[#allocation7 + $0x2c4] ss:$16 sps:$4 sm:$0xff]   ;;  %v2764_v4 = vld [vmem:[#allocation7 + $0xe0] ss:$16 sps:$4 sm:$0xff]  }
  0x74   :  { %v2766_v3 = vld [vmem:[#allocation7 + $0xe4] ss:$16 sps:$4 sm:$0xff]   ;;  %v2767_v6 = vld [vmem:[#allocation7 + $0x2e0] ss:$16 sps:$4 sm:$0xff]  }
  0x75   :  { %299 = vmatpush1.bf16.msra.mxu0 %v2714_v27  ;;  %352 = vmatpush1.bf16.msra.mxu1 %v2715_v28  ;;  %v2769_v5 = vld [vmem:[#allocation7 + $0x2e4] ss:$16 sps:$4 sm:$0xff]   ;;  %v2770_v8 = vld [vmem:[#allocation7 + $0x100] ss:$16 sps:$4 sm:$0xff]  }
  0x76   :  { %300 = vmatprep.subr.bf16.mxu0 %v2716_v29  ;;  %353 = vmatprep.subr.bf16.mxu1 %v2718_v30  ;;  %v2772_v7 = vld [vmem:[#allocation7 + $0x104] ss:$16 sps:$4 sm:$0xff]   ;;  %v2773_v10 = vld [vmem:[#allocation7 + $0x300] ss:$16 sps:$4 sm:$0xff]  }
  0x77   :  { %v2775_v9 = vld [vmem:[#allocation7 + $0x304] ss:$16 sps:$4 sm:$0xff]   ;;  %v2776_v12 = vld [vmem:[#allocation7 + $0x120] ss:$16 sps:$4 sm:$0xff]  }
  0x78   :  { %v2778_v11 = vld [vmem:[#allocation7 + $0x124] ss:$16 sps:$4 sm:$0xff]   ;;  %v2779_v14 = vld [vmem:[#allocation7 + $0x320] ss:$16 sps:$4 sm:$0xff]  }
  0x79   :  { %301 = vmatpush1.bf16.msra.mxu0 %v2720_v31  ;;  %354 = vmatpush1.bf16.msra.mxu1 %v2721_v32  ;;  %v2781_v13 = vld [vmem:[#allocation7 + $0x324] ss:$16 sps:$4 sm:$0xff]   ;;  %v2782_v16 = vld [vmem:[#allocation7 + $0x140] ss:$16 sps:$4 sm:$0xff]  }
  0x7a   :  { %1412 = vmatprep.subr.bf16.mxu1 %v2724_v39  ;;  %1465 = vmatprep.subr.bf16.mxu0 %v2727_v41  ;;  %v2784_v15 = vld [vmem:[#allocation7 + $0x144] ss:$16 sps:$4 sm:$0xff]   ;;  %v2785_v18 = vld [vmem:[#allocation7 + $0x340] ss:$16 sps:$4 sm:$0xff]   ;;  %v2820_v39 = vld [vmem:[#allocation7 + $0xc] ss:$16 sps:$4 sm:$0xff]  }
  0x7b   :  { %v2787_v17 = vld [vmem:[#allocation7 + $0x344] ss:$16 sps:$4 sm:$0xff]   ;;  %v2788_v20 = vld [vmem:[#allocation7 + $0x160] ss:$16 sps:$4 sm:$0xff]  }
  0x7c   :  { %319 = vmatmul.mubr.bf16.vlgmr.msra.gmra.mrb[0].mxu0 %v92_v35  ;;  %372 = vmatmul.mubr.bf16.vlgmr.msra.gmra.mrb[0].mxu1 %v92_v35  ;;  %v2790_v19 = vld [vmem:[#allocation7 + $0x164] ss:$16 sps:$4 sm:$0xff]   ;;  %v2791_v22 = vld [vmem:[#allocation7 + $0x360] ss:$16 sps:$4 sm:$0xff]  }
  0x7d   :  { %328 = vmatprep.mubr.bf16.mxu0 %v3175_v0  ;;  %381 = vmatprep.mubr.bf16.mxu1 %v3175_v0  ;;  %v2758_v0 = vld [vmem:[#allocation7 + $0xc0] ss:$16 sps:$4 sm:$0xff]   ;;  %v2793_v21 = vld [vmem:[#allocation7 + $0x364] ss:$16 sps:$4 sm:$0xff]  }
  0x7e   :  { %1413 = vmatpush1.bf16.msra.mxu1 %v2722_v40  ;;  %1466 = vmatpush1.bf16.msra.mxu0 %v2725_v42  ;;  %v2796_v23 = vld [vmem:[#allocation7 + $0x184] ss:$16 sps:$4 sm:$0xff]   ;;  %v2794_v24 = vld [vmem:[#allocation7 + $0x180] ss:$16 sps:$4 sm:$0xff]  }
  0x7f   :  { %1414 = vmatprep.subr.bf16.mxu1 %v2730_v43  ;;  %1467 = vmatprep.subr.bf16.mxu0 %v2733_v45  ;;  %v2799_v25 = vld [vmem:[#allocation7 + $0x384] ss:$16 sps:$4 sm:$0xff]   ;;  %v2797_v26 = vld [vmem:[#allocation7 + $0x380] ss:$16 sps:$4 sm:$0xff]  }
  0x80   :  { %v2802_v27 = vld [vmem:[#allocation7 + $0x1a4] ss:$16 sps:$4 sm:$0xff]   ;;  %v2800_v28 = vld [vmem:[#allocation7 + $0x1a0] ss:$16 sps:$4 sm:$0xff]  }
  0x81   :  { %v2803_v29 = vld [vmem:[#allocation7 + $0x3a0] ss:$16 sps:$4 sm:$0xff]   ;;  %v2805_v30 = vld [vmem:[#allocation7 + $0x3a4] ss:$16 sps:$4 sm:$0xff]  }
  0x82   :  { %1415 = vmatpush1.bf16.msra.mxu1 %v2728_v44  ;;  %1468 = vmatpush1.bf16.msra.mxu0 %v2731_v46  ;;  %v2808_v31 = vld [vmem:[#allocation7 + $0x1c4] ss:$16 sps:$4 sm:$0xff]   ;;  %v2806_v32 = vld [vmem:[#allocation7 + $0x1c0] ss:$16 sps:$4 sm:$0xff]  }
  0x83   :  { %1416 = vmatprep.subr.bf16.mxu1 %v2736_v47  ;;  %1469 = vmatprep.subr.bf16.mxu0 %v2739_v49  ;;  %v2811_v33 = vld [vmem:[#allocation7 + $0x3c4] ss:$16 sps:$4 sm:$0xff]   ;;  %v2809_v34 = vld [vmem:[#allocation7 + $0x3c0] ss:$16 sps:$4 sm:$0xff]  }
  0x84   :  { %329 = vmatmul.mubr.bf16.gmra.mrb[4].mxu0 %v93_v38  ;;  %382 = vmatmul.mubr.bf16.gmra.mrb[4].mxu1 %v93_v38  ;;  %v2812_v35 = vld [vmem:[#allocation7 + $0x1e0] ss:$16 sps:$4 sm:$0xff]   ;;  %v2814_v36 = vld [vmem:[#allocation7 + $0x1e4] ss:$16 sps:$4 sm:$0xff]  }
  0x85   :  { %v2817_v37 = vld [vmem:[#allocation7 + $0x3e4] ss:$16 sps:$4 sm:$0xff]   ;;  %v2815_v38 = vld [vmem:[#allocation7 + $0x3e0] ss:$16 sps:$4 sm:$0xff]  }
  0x86   :  { %1417 = vmatpush1.bf16.msra.mxu1 %v2734_v48  ;;  %1470 = vmatpush1.bf16.msra.mxu0 %v2737_v50 }
  0x87   :  { %1418 = vmatprep.subr.bf16.mxu1 %v2742_v51  ;;  %1471 = vmatprep.subr.bf16.mxu0 %v2745_v53 }
  0x8a   :  { %1419 = vmatpush1.bf16.msra.mxu1 %v2740_v52  ;;  %1472 = vmatpush1.bf16.msra.mxu0 %v2743_v54 }
  0x8b   :  { %1420 = vmatprep.subr.bf16.mxu1 %v2748_v55  ;;  %1473 = vmatprep.subr.bf16.mxu0 %v2751_v57 }
  0x8e   :  { %1421 = vmatpush1.bf16.msra.mxu1 %v2746_v56  ;;  %1474 = vmatpush1.bf16.msra.mxu0 %v2749_v58 }
  0x8f   :  { %1422 = vmatprep.subr.bf16.mxu1 %v2754_v59  ;;  %1475 = vmatprep.subr.bf16.mxu0 %v2757_v61 }
  0x92   :  { %1423 = vmatpush1.bf16.msra.mxu1 %v2752_v60  ;;  %1476 = vmatpush1.bf16.msra.mxu0 %v2755_v62 }
  0x93   :  { %1424 = vmatprep.subr.bf16.mxu1 %v2760_v63  ;;  %1477 = vmatprep.subr.bf16.mxu0 %v2763_v1 }
  0x96   :  { %1425 = vmatpush1.bf16.msra.mxu1 %v2758_v0  ;;  %1478 = vmatpush1.bf16.msra.mxu0 %v2761_v2 }
  0x97   :  { %1426 = vmatprep.subr.bf16.mxu1 %v2766_v3  ;;  %1479 = vmatprep.subr.bf16.mxu0 %v2769_v5 }
  0x9a   :  { %1427 = vmatpush1.bf16.msra.mxu1 %v2764_v4  ;;  %1480 = vmatpush1.bf16.msra.mxu0 %v2767_v6 }
  0x9b   :  { %1428 = vmatprep.subr.bf16.mxu1 %v2772_v7  ;;  %1481 = vmatprep.subr.bf16.mxu0 %v2775_v9 }
  0x9e   :  { %1429 = vmatpush1.bf16.msra.mxu1 %v2770_v8  ;;  %1482 = vmatpush1.bf16.msra.mxu0 %v2773_v10 }
  0x9f   :  { %1430 = vmatprep.subr.bf16.mxu1 %v2778_v11  ;;  %1483 = vmatprep.subr.bf16.mxu0 %v2781_v13 }
  0xa2   :  { %1431 = vmatpush1.bf16.msra.mxu1 %v2776_v12  ;;  %1484 = vmatpush1.bf16.msra.mxu0 %v2779_v14 }
  0xa3   :  { %1432 = vmatprep.subr.bf16.mxu1 %v2784_v15  ;;  %1485 = vmatprep.subr.bf16.mxu0 %v2787_v17 }
  0xa6   :  { %1433 = vmatpush1.bf16.msra.mxu1 %v2782_v16  ;;  %1486 = vmatpush1.bf16.msra.mxu0 %v2785_v18 }
  0xa7   :  { %1434 = vmatprep.subr.bf16.mxu1 %v2790_v19  ;;  %1487 = vmatprep.subr.bf16.mxu0 %v2793_v21 }
  0xaa   :  { %1435 = vmatpush1.bf16.msra.mxu1 %v2788_v20  ;;  %1488 = vmatpush1.bf16.msra.mxu0 %v2791_v22 }
  0xab   :  { %1436 = vmatprep.subr.bf16.mxu1 %v2796_v23  ;;  %1489 = vmatprep.subr.bf16.mxu0 %v2799_v25 }
  0xae   :  { %1437 = vmatpush1.bf16.msra.mxu1 %v2794_v24  ;;  %1490 = vmatpush1.bf16.msra.mxu0 %v2797_v26 }
  0xaf   :  { %1438 = vmatprep.subr.bf16.mxu1 %v2802_v27  ;;  %1491 = vmatprep.subr.bf16.mxu0 %v2805_v30 }
  0xb2   :  { %1439 = vmatpush1.bf16.msra.mxu1 %v2800_v28  ;;  %1492 = vmatpush1.bf16.msra.mxu0 %v2803_v29 }
  0xb3   :  { %1440 = vmatprep.subr.bf16.mxu1 %v2808_v31  ;;  %1493 = vmatprep.subr.bf16.mxu0 %v2811_v33 }
  0xb6   :  { %1441 = vmatpush1.bf16.msra.mxu1 %v2806_v32  ;;  %1494 = vmatpush1.bf16.msra.mxu0 %v2809_v34 }
  0xb7   :  { %1442 = vmatprep.subr.bf16.mxu1 %v2814_v36  ;;  %1495 = vmatprep.subr.bf16.mxu0 %v2817_v37 }
  0xba   :  { %1443 = vmatpush1.bf16.msra.mxu1 %v2812_v35  ;;  %1496 = vmatpush1.bf16.msra.mxu0 %v2815_v38 }
  0xbb   :  { %1518 = vmatprep.subr.bf16.mxu1 %v2820_v39 }
 0x14f   :  { %v320_v40 = vpop.f32.mrb[0].mxu0  ;;  %v373_v41 = vpop.f32.mrb[0].mxu1 }
 0x150   :  { %v3278_v42 = vpop.f32.mrb[1].mxu0  ;;  %v3280_v43 = vpop.f32.mrb[1].mxu1 }
 0x151   :  { %v324_v44 = vpop.f32.mrb[2].mxu0  ;;  %v377_v45 = vpop.f32.mrb[2].mxu1 }
 0x152   :  { %v395_v46 = vadd.f32 %v324_v44, %v320_v40  ;;  %v413_v47 = vadd.f32 %v377_v45, %v373_v41  ;;  %v3282_v48 = vpop.f32.mrb[3].mxu0  ;;  %v3284_v49 = vpop.f32.mrb[3].mxu1 }
 0x153   :  { %v404_v50 = vadd.f32 %v3282_v48, %v3278_v42  ;;  %v422_v51 = vadd.f32 %v3284_v49, %v3280_v43 }
 0x157   :  { %v330_v52 = vpop.f32.mrb[4].mxu0  ;;  %v383_v53 = vpop.f32.mrb[4].mxu1 }
 0x158   :  { %v396_v54 = vadd.f32 %v395_v46, %v330_v52  ;;  %v414_v55 = vadd.f32 %v413_v47, %v383_v53  ;;  %v332_v56 = vpop.f32.mrb[5].mxu0  ;;  %v3290_v57 = vpop.f32.mrb[5].mxu1 }
 0x159   :  { %v405_v58 = vadd.f32 %v404_v50, %v332_v56  ;;  %v423_v59 = vadd.f32 %v422_v51, %v3290_v57  ;;  %v334_v60 = vpop.f32.mrb[6].mxu0  ;;  %v387_v61 = vpop.f32.mrb[6].mxu1 }
 0x15a   :  { %v397_v62 = vadd.f32 %v396_v54, %v334_v60  ;;  %v415_v63 = vadd.f32 %v414_v55, %v387_v61  ;;  %v336_v0 = vpop.f32.mrb[7].mxu0  ;;  %v389_v1 = vpop.f32.mrb[7].mxu1 }
 0x15b   :  { %v406_v2 = vadd.f32 %v405_v58, %v336_v0  ;;  %v424_v3 = vadd.f32 %v423_v59, %v389_v1 }
 0x15c   :  { %v398_v4 = vrot.slane %v397_v62, 4  ;;  %v416_v5 = vrot.slane %v415_v63, 4 }
 0x15d   :  { %v407_v6 = vrot.slane %v406_v2, 4  ;;  %v425_v7 = vrot.slane %v424_v3, 4 }
 0x15e   :  { %v399_v8 = vadd.f32 %v398_v4, %v397_v62  ;;  %v417_v9 = vadd.f32 %v416_v5, %v415_v63 }
 0x15f   :  { %v408_v10 = vadd.f32 %v407_v6, %v406_v2  ;;  %v426_v11 = vadd.f32 %v425_v7, %v424_v3 }
 0x160   :  { %v400_v12 = vrot.slane %v399_v8, 2  ;;  %v418_v13 = vrot.slane %v417_v9, 2 }
 0x161   :  { %v409_v14 = vrot.slane %v408_v10, 2  ;;  %v427_v15 = vrot.slane %v426_v11, 2 }
 0x162   :  { %v401_v16 = vadd.f32 %v400_v12, %v399_v8  ;;  %v419_v17 = vadd.f32 %v418_v13, %v417_v9 }
 0x163   :  { %v410_v18 = vadd.f32 %v409_v14, %v408_v10  ;;  %v428_v19 = vadd.f32 %v427_v15, %v426_v11 }
 0x164   :  { %v402_v20 = vrot.slane %v401_v16, 1  ;;  %v420_v21 = vrot.slane %v419_v17, 1 }
 0x165   :  { %v411_v22 = vrot.slane %v410_v18, 1  ;;  %v429_v23 = vrot.slane %v428_v19, 1 }
 0x166   :  { %v403_v24 = vadd.f32 %v402_v20, %v401_v16  ;;  %v421_v25 = vadd.f32 %v420_v21, %v419_v17 }
 0x167   :  { %v412_v26 = vadd.f32 %v411_v22, %v410_v18  ;;  %v430_v27 = vadd.f32 %v429_v23, %v428_v19 }
 0x168   :  { %v432_v28 = vmul.f32 0.03125, %v403_v24  ;;  %v434_v29 = vmul.f32 0.03125, %v421_v25 }
 0x169   :  { %v433_v30 = vmul.f32 0.03125, %v412_v26  ;;  %v435_v31 = vmul.f32 0.03125, %v430_v27 }
 0x16a   :  { %v3293_v32 = vsub.f32 %v320_v40, %v432_v28  ;;  %v3295_v33 = vsub.f32 %v324_v44, %v432_v28  ;;  %v3297_v34 = vsub.f32 %v330_v52, %v432_v28  ;;  %v3299_v35 = vsub.f32 %v334_v60, %v432_v28 }
 0x16b   :  { %v3301_v36 = vsub.f32 %v373_v41, %v434_v29  ;;  %v3303_v37 = vsub.f32 %v377_v45, %v434_v29  ;;  %v3305_v38 = vsub.f32 %v383_v53, %v434_v29  ;;  %v3307_v39 = vsub.f32 %v387_v61, %v434_v29 }
 0x16c   :  { %v452_v46 = vmul.f32 %v3293_v32, %v3293_v32  ;;  %v456_v40 = vmul.f32 %v3295_v33, %v3295_v33  ;;  %v460_v44 = vmul.f32 %v3297_v34, %v3297_v34  ;;  %v464_v47 = vmul.f32 %v3299_v35, %v3299_v35 }
 0x16d   :  { %v454_v41 = vmul.f32 %v3301_v36, %v3301_v36  ;;  %v458_v45 = vmul.f32 %v3303_v37, %v3303_v37  ;;  %v462_v50 = vmul.f32 %v3305_v38, %v3305_v38  ;;  %v3324_v52 = vsub.f32 %v3278_v42, %v433_v30 }
 0x16e   :  { %v468_v51 = vadd.f32 %v456_v40, %v452_v46  ;;  %v3327_v53 = vsub.f32 %v3282_v48, %v433_v30  ;;  %v3329_v54 = vsub.f32 %v332_v56, %v433_v30  ;;  %v3331_v58 = vsub.f32 %v336_v0, %v433_v30 }
 0x16f   :  { %v486_v55 = vadd.f32 %v458_v45, %v454_v41  ;;  %v3334_v59 = vsub.f32 %v3280_v43, %v435_v31  ;;  %v3337_v60 = vsub.f32 %v3284_v49, %v435_v31  ;;  %v466_v62 = vmul.f32 %v3307_v39, %v3307_v39 }
 0x170   :  { %v469_v61 = vadd.f32 %v468_v51, %v460_v44  ;;  %v453_v42 = vmul.f32 %v3324_v52, %v3324_v52  ;;  %v457_v48 = vmul.f32 %v3327_v53, %v3327_v53  ;;  %v461_v63 = vmul.f32 %v3329_v54, %v3329_v54 }
 0x171   :  { %v487_v56 = vadd.f32 %v486_v55, %v462_v50  ;;  %v3348_v43 = vsub.f32 %v3290_v57, %v435_v31  ;;  %v3350_v0 = vsub.f32 %v389_v1, %v435_v31  ;;  %v455_v3 = vmul.f32 %v3334_v59, %v3334_v59 }
 0x172   :  { %v470_v49 = vadd.f32 %v469_v61, %v464_v47  ;;  %v477_v2 = vadd.f32 %v457_v48, %v453_v42  ;;  %v459_v4 = vmul.f32 %v3337_v60, %v3337_v60  ;;  %v465_v6 = vmul.f32 %v3331_v58, %v3331_v58 }
 0x173   :  { %v488_v5 = vadd.f32 %v487_v56, %v466_v62  ;;  %v463_v57 = vmul.f32 %v3348_v43, %v3348_v43  ;;  %v467_v12 = vmul.f32 %v3350_v0, %v3350_v0  ;;  %v3176_v48 = vmov 1966171168  }
 0x174   :  { %v471_v7 = vrot.slane %v470_v49, 4  ;;  %v478_v8 = vadd.f32 %v477_v2, %v461_v63  ;;  %v495_v9 = vadd.f32 %v459_v4, %v455_v3  ;;  %v523_v56 = vunpack.c.l.s4 %v3176_v48 }
 0x175   :  { %v489_v1 = vrot.slane %v488_v5, 4  ;;  %v525_v63 = vlaneseq }
 0x176   :  { %v472_v10 = vadd.f32 %v471_v7, %v470_v49  ;;  %v479_v11 = vadd.f32 %v478_v8, %v465_v6  ;;  %v496_v13 = vadd.f32 %v495_v9, %v463_v57  ;;  %v524_v49 = vunpack.c.0.s8 %v523_v56  ;;  %v2818_v56 = vld [vmem:[#allocation7 + $0x8] ss:$16 sps:$4 sm:$0xff]  }
 0x177   :  { %v490_v14 = vadd.f32 %v489_v1, %v488_v5  ;;  %v526_v2 = vshrl.u32 %v525_v63, 7 }
 0x178   :  { %v473_v15 = vrot.slane %v472_v10, 2  ;;  %v480_v16 = vrot.slane %v479_v11, 4  ;;  %v497_v17 = vadd.f32 %v496_v13, %v467_v12  ;;  %v394_v13 = vld [vmem:[#allocation10 + $0x1] ss:$8 sm:$0xf] }
 0x179   :  { %v491_v18 = vrot.slane %v490_v14, 2  ;;  %v3362_v5 = vsub.s32 %v524_v49, %v526_v2  ;;  %v3366_v12 = vsub.s32 0, %v526_v2 }
 0x17a   :  { %v474_v19 = vadd.f32 %v473_v15, %v472_v10  ;;  %v481_v20 = vadd.f32 %v480_v16, %v479_v11  ;;  %v498_v21 = vrot.slane %v497_v17, 4  ;;  %v392_v11 = vld [vmem:[#allocation10] ss:$8 sm:$0xf]  ;;  %v3369_v15 = vsub.s32 2, %v526_v2 }
 0x17b   :  { %v492_v22 = vadd.f32 %v491_v18, %v490_v14  ;;  %v3371_v16 = vsub.s32 3, %v526_v2 }
 0x17c   :  { %v475_v23 = vrot.slane %v474_v19, 1  ;;  %v482_v24 = vrot.slane %v481_v20, 2  ;;  %v499_v25 = vadd.f32 %v498_v21, %v497_v17  ;;  %v3373_v17 = vsub.s32 1, %v526_v2 }
 0x17d   :  { %v493_v26 = vrot.slane %v492_v22, 1 }
 0x17e   :  { %v476_v27 = vadd.f32 %v475_v23, %v474_v19  ;;  %v483_v28 = vadd.f32 %v482_v24, %v481_v20  ;;  %v500_v29 = vrot.slane %v499_v25, 2  ;;  %v599_v19 = vrot.slane %v394_v13, %v3371_v16 }
 0x17f   :  { %v494_v30 = vadd.f32 %v493_v26, %v492_v22  ;;  %v591_v20 = vrot.slane %v394_v13, %v3373_v17  ;;  %v595_v26 = vrot.slane %v394_v13, %v3369_v15 }
 0x180   :  { %v504_v31 = vmul.f32 0.03125, %v476_v27  ;;  %v484_v46 = vrot.slane %v483_v28, 1  ;;  %v501_v40 = vadd.f32 %v500_v29, %v499_v25  ;;  %v587_v25 = vrot.slane %v394_v13, %v3366_v12 }
 0x181   :  { %v506_v44 = vmul.f32 0.03125, %v494_v30 }
 0x182   :  { %v508_v47 = vadd.f32 1e-05, %v504_v31  ;;  %v485_v41 = vadd.f32 %v484_v46, %v483_v28  ;;  %v502_v45 = vrot.slane %v501_v40, 1 }
 0x183   :  { %v510_v50 = vadd.f32 1e-05, %v506_v44 }
 0x184   :  { %v505_v51 = vmul.f32 0.03125, %v485_v41  ;;  %v503_v55 = vadd.f32 %v502_v45, %v501_v40  ;;  %3010 = vrsqrt.f32 %v508_v47 }
 0x185   :  { %3012 = vrsqrt.f32 %v510_v50 }
 0x186   :  { %v509_v61 = vadd.f32 1e-05, %v505_v51  ;;  %v507_v62 = vmul.f32 0.03125, %v503_v55 }
 0x188   :  { %3014 = vrsqrt.f32 %v509_v61  ;;  %v511_v42 = vadd.f32 1e-05, %v507_v62 }
 0x18a   :  { %3016 = vrsqrt.f32 %v511_v42 }
 0x18e   :  { %v3011_v3 = vpop.eup %3010 }
 0x18f   :  { %v3013_v4 = vpop.eup %3012 }
 0x192   :  { %v3015_v6 = vpop.eup %3014 }
 0x193   :  { %v520_v7 = vcombine.low %v3011_v3, %v3015_v6  ;;  %v2823_v6 = vld [vmem:[#allocation7 + $0x2c] ss:$16 sps:$4 sm:$0xff]  }
 0x194   :  { %v3017_v8 = vpop.eup %3016 }
 0x195   :  { %v521_v57 = vcombine.low %v3013_v4, %v3017_v8  ;;  %v528_v9 = vrot.slane %v520_v7, %v3362_v5 }
 0x197   :  { %v535_v1 = vrot.slane %v521_v57, %v3362_v5 }
 0x199   :  { %v536_v10 = vcombine.low %v528_v9, %v535_v1 }
 0x19b   :  { %v543_v14 = vrot.slane %v536_v10, %v3362_v5 }
 0x19d   :  { %v545_v18 = vmul.f32 %v543_v14, %v392_v11 }
 0x19f   :  { %v562_v21 = vrot.slane %v545_v18, %v3371_v16  ;;  %v554_v22 = vrot.slane %v545_v18, %v3373_v17  ;;  %v550_v23 = vrot.slane %v545_v18, %v3366_v12  ;;  %v558_v24 = vrot.slane %v545_v18, %v3369_v15  ;;  %v2826_v18 = vld [vmem:[#allocation7 + $0x4c] ss:$16 sps:$4 sm:$0xff]  }
 0x1a1   :  { %v582_v27 = vmul.f32 %v562_v21, %v3350_v0  ;;  %v568_v28 = vmul.f32 %v554_v22, %v3324_v52  ;;  %v572_v29 = vmul.f32 %v554_v22, %v3327_v53  ;;  %v570_v30 = vmul.f32 %v562_v21, %v3334_v59 }
 0x1a2   :  { %v574_v31 = vmul.f32 %v562_v21, %v3337_v60  ;;  %v567_v46 = vmul.f32 %v550_v23, %v3293_v32  ;;  %v571_v40 = vmul.f32 %v550_v23, %v3295_v33  ;;  %v569_v44 = vmul.f32 %v558_v24, %v3301_v36 }
 0x1a3   :  { %v619_v47 = vadd.f32 %v599_v19, %v582_v27  ;;  %v605_v41 = vadd.f32 %v591_v20, %v568_v28  ;;  %v609_v45 = vadd.f32 %v591_v20, %v572_v29  ;;  %v607_v50 = vadd.f32 %v599_v19, %v570_v30 }
 0x1a4   :  { %v611_v51 = vadd.f32 %v599_v19, %v574_v31  ;;  %v604_v0 = vadd.f32 %v587_v25, %v567_v46  ;;  %v608_v55 = vadd.f32 %v587_v25, %v571_v40  ;;  %v573_v52 = vmul.f32 %v558_v24, %v3303_v37  ;;  %v2827_v31 = vld [vmem:[#allocation7 + $0x68] ss:$16 sps:$4 sm:$0xff]   ;;  %v2835_v40 = vld [vmem:[#allocation7 + $0xac] ss:$16 sps:$4 sm:$0xff]  }
 0x1a5   :  { %v621_v53 = vmax.f32 %v605_v41, 0.0  ;;  %v625_v61 = vmax.f32 %v609_v45, 0.0  ;;  %v623_v59 = vmax.f32 %v607_v50, 0.0  ;;  %v606_v62 = vadd.f32 %v595_v26, %v569_v44  ;;  %v2830_v46 = vld [vmem:[#allocation7 + $0x88] ss:$16 sps:$4 sm:$0xff]  }
 0x1a6   :  { %v627_v60 = vmax.f32 %v611_v51, 0.0  ;;  %v620_v42 = vmax.f32 %v604_v0, 0.0  ;;  %v624_v32 = vmax.f32 %v608_v55, 0.0  ;;  %v610_v48 = vadd.f32 %v595_v26, %v573_v52  ;;  %v2833_v44 = vld [vmem:[#allocation7 + $0xa8] ss:$16 sps:$4 sm:$0xff]  }
 0x1a7   :  { %v637_v33 = vpack.c.bf16 %v625_v61, %v621_v53  ;;  %v622_v36 = vmax.f32 %v606_v62, 0.0  ;;  %v576_v63 = vmul.f32 %v554_v22, %v3329_v54  ;;  %v580_v49 = vmul.f32 %v554_v22, %v3331_v58  ;;  %v2836_v41 = vld [vmem:[#allocation7 + $0xc8] ss:$16 sps:$4 sm:$0xff]   ;;  %v2841_v45 = vld [vmem:[#allocation7 + $0xec] ss:$16 sps:$4 sm:$0xff]  }
 0x1a8   :  { %v3394_v2 = vpack.c.bf16 %v627_v60, %v623_v59  ;;  %v3396_v3 = vpack.c.bf16 %v624_v32, %v620_v42  ;;  %v626_v37 = vmax.f32 %v610_v48, 0.0  ;;  %v578_v4 = vmul.f32 %v562_v21, %v3348_v43  ;;  %v2821_v43 = vld [vmem:[#allocation7 + $0x28] ss:$16 sps:$4 sm:$0xff]   ;;  %v2844_v51 = vld [vmem:[#allocation7 + $0x10c] ss:$16 sps:$4 sm:$0xff]  }
 0x1a9   :  { %1444 = vmatprep.mubr.bf16.mxu1 %v637_v33  ;;  %v613_v7 = vadd.f32 %v591_v20, %v576_v63  ;;  %v617_v8 = vadd.f32 %v591_v20, %v580_v49  ;;  %v575_v57 = vmul.f32 %v550_v23, %v3297_v34  ;;  %v635_v9 = vmax.f32 %v619_v47, 0.0  ;;  %v2838_v47 = vld [vmem:[#allocation7 + $0xcc] ss:$16 sps:$4 sm:$0xff]   ;;  %v2839_v50 = vld [vmem:[#allocation7 + $0xe8] ss:$16 sps:$4 sm:$0xff]  }
 0x1aa   :  { %1497 = vmatprep.mubr.bf16.mxu0 %v3394_v2  ;;  %1445 = vmatmul.mubr.bf16.vlgmr.msra.gmra.mrb[8].mxu1 %v3396_v3  ;;  %v3402_v54 = vpack.c.bf16 %v626_v37, %v622_v36  ;;  %v615_v58 = vadd.f32 %v599_v19, %v578_v4  ;;  %v579_v1 = vmul.f32 %v550_v23, %v3299_v35  ;;  %v2842_v0 = vld [vmem:[#allocation7 + $0x108] ss:$16 sps:$4 sm:$0xff]   ;;  %v2847_v55 = vld [vmem:[#allocation7 + $0x12c] ss:$16 sps:$4 sm:$0xff]  }
 0x1ab   :  { %1519 = vmatpush1.bf16.msra.mxu1 %v2818_v56  ;;  %v629_v10 = vmax.f32 %v613_v7, 0.0  ;;  %v633_v11 = vmax.f32 %v617_v8, 0.0  ;;  %v612_v13 = vadd.f32 %v587_v25, %v575_v57  ;;  %v577_v14 = vmul.f32 %v558_v24, %v3305_v38  ;;  %v2824_v38 = vld [vmem:[#allocation7 + $0x48] ss:$16 sps:$4 sm:$0xff]   ;;  %v2850_v53 = vld [vmem:[#allocation7 + $0x14c] ss:$16 sps:$4 sm:$0xff]  }
 0x1ac   :  { %1498 = vmatmul.mubr.bf16.vlgmr.msra.gmra.mrb[8].mxu0 %v3402_v54  ;;  %v631_v34 = vmax.f32 %v615_v58, 0.0  ;;  %1520 = vmatprep.subr.bf16.mxu1 %v2823_v6  ;;  %v616_v20 = vadd.f32 %v587_v25, %v579_v1  ;;  %v581_v21 = vmul.f32 %v558_v24, %v3307_v39  ;;  %v2829_v39 = vld [vmem:[#allocation7 + $0x6c] ss:$16 sps:$4 sm:$0xff]   ;;  %v2845_v52 = vld [vmem:[#allocation7 + $0x128] ss:$16 sps:$4 sm:$0xff]  }
 0x1ad   :  { %v3408_v22 = vpack.c.bf16 %v633_v11, %v629_v10  ;;  %v628_v19 = vmax.f32 %v612_v13, 0.0  ;;  %v614_v27 = vadd.f32 %v595_v26, %v577_v14  ;;  %v2848_v61 = vld [vmem:[#allocation7 + $0x148] ss:$16 sps:$4 sm:$0xff]   ;;  %v2853_v59 = vld [vmem:[#allocation7 + $0x16c] ss:$16 sps:$4 sm:$0xff]  }
 0x1ae   :  { %v3410_v35 = vpack.c.bf16 %v635_v9, %v631_v34  ;;  %v632_v23 = vmax.f32 %v616_v20, 0.0  ;;  %v618_v28 = vadd.f32 %v595_v26, %v581_v21  ;;  %v2832_v26 = vld [vmem:[#allocation7 + $0x8c] ss:$16 sps:$4 sm:$0xff]   ;;  %v2851_v62 = vld [vmem:[#allocation7 + $0x168] ss:$16 sps:$4 sm:$0xff]  }
 0x1af   :  { %1454 = vmatprep.mubr.bf16.mxu1 %v3408_v22  ;;  %1521 = vmatpush1.bf16.msra.mxu1 %v2821_v43  ;;  %v630_v29 = vmax.f32 %v614_v27, 0.0  ;;  %v2856_v60 = vld [vmem:[#allocation7 + $0x18c] ss:$16 sps:$4 sm:$0xff]   ;;  %v2854_v42 = vld [vmem:[#allocation7 + $0x188] ss:$16 sps:$4 sm:$0xff]  }
 0x1b0   :  { %1507 = vmatprep.mubr.bf16.mxu0 %v3410_v35  ;;  %1522 = vmatprep.subr.bf16.mxu1 %v2826_v18  ;;  %v3414_v30 = vpack.c.bf16 %v632_v23, %v628_v19  ;;  %v634_v25 = vmax.f32 %v618_v28, 0.0  ;;  %v2859_v32 = vld [vmem:[#allocation7 + $0x1ac] ss:$16 sps:$4 sm:$0xff]   ;;  %v2857_v48 = vld [vmem:[#allocation7 + $0x1a8] ss:$16 sps:$4 sm:$0xff]  }
 0x1b1   :  { %v2860_v56 = vld [vmem:[#allocation7 + $0x1c8] ss:$16 sps:$4 sm:$0xff]   ;;  %v2865_v36 = vld [vmem:[#allocation7 + $0x1ec] ss:$16 sps:$4 sm:$0xff]  }
 0x1b2   :  { %1455 = vmatmul.mubr.bf16.gmra.mrb[12].mxu1 %v3414_v30  ;;  %v3417_v24 = vpack.c.bf16 %v634_v25, %v630_v29  ;;  %v2863_v63 = vld [vmem:[#allocation7 + $0x1e8] ss:$16 sps:$4 sm:$0xff]   ;;  %v2868_v49 = vld [vmem:[#allocation7 + $0x20c] ss:$16 sps:$4 sm:$0xff]  }
 0x1b3   :  { %1523 = vmatpush1.bf16.msra.mxu1 %v2824_v38  ;;  %1550 = vmatprep.mubr.bf16.mxu1 %v637_v33  ;;  %v2862_v33 = vld [vmem:[#allocation7 + $0x1cc] ss:$16 sps:$4 sm:$0xff]   ;;  %v2866_v37 = vld [vmem:[#allocation7 + $0x208] ss:$16 sps:$4 sm:$0xff]  }
 0x1b4   :  { %1508 = vmatmul.mubr.bf16.gmra.mrb[12].mxu0 %v3417_v24  ;;  %1524 = vmatprep.subr.bf16.mxu1 %v2829_v39  ;;  %v2871_v4 = vld [vmem:[#allocation7 + $0x22c] ss:$16 sps:$4 sm:$0xff]   ;;  %v2869_v6 = vld [vmem:[#allocation7 + $0x228] ss:$16 sps:$4 sm:$0xff]  }
 0x1b5   :  { %v2874_v7 = vld [vmem:[#allocation7 + $0x24c] ss:$16 sps:$4 sm:$0xff]   ;;  %v2872_v8 = vld [vmem:[#allocation7 + $0x248] ss:$16 sps:$4 sm:$0xff]  }
 0x1b6   :  { %v2877_v57 = vld [vmem:[#allocation7 + $0x26c] ss:$16 sps:$4 sm:$0xff]   ;;  %v2875_v58 = vld [vmem:[#allocation7 + $0x268] ss:$16 sps:$4 sm:$0xff]  }
 0x1b7   :  { %1525 = vmatpush1.bf16.msra.mxu1 %v2827_v31  ;;  %v2880_v9 = vld [vmem:[#allocation7 + $0x28c] ss:$16 sps:$4 sm:$0xff]   ;;  %v2881_v10 = vld [vmem:[#allocation7 + $0x2a8] ss:$16 sps:$4 sm:$0xff]  }
 0x1b8   :  { %1526 = vmatprep.subr.bf16.mxu1 %v2832_v26  ;;  %v2883_v1 = vld [vmem:[#allocation7 + $0x2ac] ss:$16 sps:$4 sm:$0xff]   ;;  %v2884_v43 = vld [vmem:[#allocation7 + $0x2c8] ss:$16 sps:$4 sm:$0xff]  }
 0x1b9   :  { %v2886_v11 = vld [vmem:[#allocation7 + $0x2cc] ss:$16 sps:$4 sm:$0xff]   ;;  %v2887_v14 = vld [vmem:[#allocation7 + $0x2e8] ss:$16 sps:$4 sm:$0xff]  }
 0x1ba   :  { %v2889_v13 = vld [vmem:[#allocation7 + $0x2ec] ss:$16 sps:$4 sm:$0xff]   ;;  %v2893_v20 = vld [vmem:[#allocation7 + $0x328] ss:$16 sps:$4 sm:$0xff]  }
 0x1bb   :  { %1527 = vmatpush1.bf16.msra.mxu1 %v2830_v46  ;;  %v2892_v34 = vld [vmem:[#allocation7 + $0x30c] ss:$16 sps:$4 sm:$0xff]   ;;  %v2899_v27 = vld [vmem:[#allocation7 + $0x368] ss:$16 sps:$4 sm:$0xff]  }
 0x1bc   :  { %1528 = vmatprep.subr.bf16.mxu1 %v2835_v40  ;;  %v2895_v18 = vld [vmem:[#allocation7 + $0x32c] ss:$16 sps:$4 sm:$0xff]   ;;  %v2902_v28 = vld [vmem:[#allocation7 + $0x388] ss:$16 sps:$4 sm:$0xff]  }
 0x1bd   :  { %v2898_v21 = vld [vmem:[#allocation7 + $0x34c] ss:$16 sps:$4 sm:$0xff]   ;;  %v2905_v29 = vld [vmem:[#allocation7 + $0x3a8] ss:$16 sps:$4 sm:$0xff]  }
 0x1be   :  { %v2901_v19 = vld [vmem:[#allocation7 + $0x36c] ss:$16 sps:$4 sm:$0xff]   ;;  %v2908_v25 = vld [vmem:[#allocation7 + $0x3c8] ss:$16 sps:$4 sm:$0xff]  }
 0x1bf   :  { %1529 = vmatpush1.bf16.msra.mxu1 %v2833_v44  ;;  %v2904_v23 = vld [vmem:[#allocation7 + $0x38c] ss:$16 sps:$4 sm:$0xff]   ;;  %v2911_v31 = vld [vmem:[#allocation7 + $0x3e8] ss:$16 sps:$4 sm:$0xff]  }
 0x1c0   :  { %1530 = vmatprep.subr.bf16.mxu1 %v2838_v47  ;;  %v2907_v38 = vld [vmem:[#allocation7 + $0x3ac] ss:$16 sps:$4 sm:$0xff]  }
 0x1c1   :  { %v2913_v39 = vld [vmem:[#allocation7 + $0x3ec] ss:$16 sps:$4 sm:$0xff]  }
 0x1c3   :  { %1531 = vmatpush1.bf16.msra.mxu1 %v2836_v41 }
 0x1c4   :  { %1532 = vmatprep.subr.bf16.mxu1 %v2841_v45 }
 0x1c7   :  { %1533 = vmatpush1.bf16.msra.mxu1 %v2839_v50 }
 0x1c8   :  { %1534 = vmatprep.subr.bf16.mxu1 %v2844_v51 }
 0x1cb   :  { %1535 = vmatpush1.bf16.msra.mxu1 %v2842_v0 }
 0x1cc   :  { %1536 = vmatprep.subr.bf16.mxu1 %v2847_v55 }
 0x1cf   :  { %1537 = vmatpush1.bf16.msra.mxu1 %v2845_v52 }
 0x1d0   :  { %1538 = vmatprep.subr.bf16.mxu1 %v2850_v53 }
 0x1d3   :  { %1539 = vmatpush1.bf16.msra.mxu1 %v2848_v61 }
 0x1d4   :  { %1540 = vmatprep.subr.bf16.mxu1 %v2853_v59 }
 0x1d7   :  { %1541 = vmatpush1.bf16.msra.mxu1 %v2851_v62 }
 0x1d8   :  { %1542 = vmatprep.subr.bf16.mxu1 %v2856_v60 }
 0x1db   :  { %1543 = vmatpush1.bf16.msra.mxu1 %v2854_v42 }
 0x1dc   :  { %1544 = vmatprep.subr.bf16.mxu1 %v2859_v32 }
 0x1df   :  { %1545 = vmatpush1.bf16.msra.mxu1 %v2857_v48 }
 0x1e0   :  { %1546 = vmatprep.subr.bf16.mxu1 %v2862_v33 }
 0x1e3   :  { %1547 = vmatpush1.bf16.msra.mxu1 %v2860_v56 }
 0x1e4   :  { %1548 = vmatprep.subr.bf16.mxu1 %v2865_v36 }
 0x1e7   :  { %1549 = vmatpush1.bf16.msra.mxu1 %v2863_v63 }
 0x1e8   :  { %1571 = vmatprep.subr.bf16.mxu1 %v2868_v49 }
 0x1ea   :  { %1551 = vmatmul.mubr.bf16.vlgmr.msra.gmra.mrb[16].mxu1 %v3396_v3  ;;  %v2878_v3 = vld [vmem:[#allocation7 + $0x288] ss:$16 sps:$4 sm:$0xff]  }
 0x1eb   :  { %1560 = vmatprep.mubr.bf16.mxu1 %v3408_v22  ;;  %1572 = vmatpush1.bf16.msra.mxu1 %v2866_v37  ;;  %v2896_v22 = vld [vmem:[#allocation7 + $0x348] ss:$16 sps:$4 sm:$0xff]  }
 0x1ec   :  { %1573 = vmatprep.subr.bf16.mxu1 %v2871_v4 }
 0x1ef   :  { %1574 = vmatpush1.bf16.msra.mxu1 %v2869_v6 }
 0x1f0   :  { %1575 = vmatprep.subr.bf16.mxu1 %v2874_v7 }
 0x1f2   :  { %1561 = vmatmul.mubr.bf16.gmra.mrb[20].mxu1 %v3414_v30  ;;  %v2910_v30 = vld [vmem:[#allocation7 + $0x3cc] ss:$16 sps:$4 sm:$0xff]  }
 0x1f3   :  { %1576 = vmatpush1.bf16.msra.mxu1 %v2872_v8  ;;  %1603 = vmatprep.mubr.bf16.mxu1 %v3394_v2  ;;  %v2890_v2 = vld [vmem:[#allocation7 + $0x308] ss:$16 sps:$4 sm:$0xff]  }
 0x1f4   :  { %1577 = vmatprep.subr.bf16.mxu1 %v2877_v57 }
 0x1f7   :  { %1578 = vmatpush1.bf16.msra.mxu1 %v2875_v58 }
 0x1f8   :  { %1579 = vmatprep.subr.bf16.mxu1 %v2880_v9 }
 0x1fb   :  { %1580 = vmatpush1.bf16.msra.mxu1 %v2878_v3 }
 0x1fc   :  { %1581 = vmatprep.subr.bf16.mxu1 %v2883_v1 }
 0x1ff   :  { %1582 = vmatpush1.bf16.msra.mxu1 %v2881_v10 }
 0x200   :  { %1583 = vmatprep.subr.bf16.mxu1 %v2886_v11 }
 0x203   :  { %1584 = vmatpush1.bf16.msra.mxu1 %v2884_v43 }
 0x204   :  { %1585 = vmatprep.subr.bf16.mxu1 %v2889_v13 }
 0x207   :  { %1586 = vmatpush1.bf16.msra.mxu1 %v2887_v14 }
 0x208   :  { %1587 = vmatprep.subr.bf16.mxu1 %v2892_v34  ;;  %v2916_v34 = vld [vmem:[#allocation8 + $0x4] ss:$8 sps:$4 sm:$0xff]  }
 0x209   :  { %2273 = vmatprep.subr.bf16.mxu0 %v2916_v34 }
 0x20b   :  { %1588 = vmatpush1.bf16.msra.mxu1 %v2890_v2 }
 0x20c   :  { %1589 = vmatprep.subr.bf16.mxu1 %v2895_v18  ;;  %v2914_v18 = vld [vmem:[#allocation8] ss:$8 sps:$4 sm:$0xff]  }
 0x20d   :  { %2274 = vmatpush1.bf16.msra.mxu0 %v2914_v18 }
 0x20f   :  { %1590 = vmatpush1.bf16.msra.mxu1 %v2893_v20 }
 0x210   :  { %1591 = vmatprep.subr.bf16.mxu1 %v2898_v21 }
 0x213   :  { %1592 = vmatpush1.bf16.msra.mxu1 %v2896_v22 }
 0x214   :  { %1593 = vmatprep.subr.bf16.mxu1 %v2901_v19 }
 0x217   :  { %1594 = vmatpush1.bf16.msra.mxu1 %v2899_v27 }
 0x218   :  { %1595 = vmatprep.subr.bf16.mxu1 %v2904_v23 }
 0x21b   :  { %1596 = vmatpush1.bf16.msra.mxu1 %v2902_v28 }
 0x21c   :  { %1597 = vmatprep.subr.bf16.mxu1 %v2907_v38 }
 0x21f   :  { %1598 = vmatpush1.bf16.msra.mxu1 %v2905_v29 }
 0x220   :  { %1599 = vmatprep.subr.bf16.mxu1 %v2910_v30 }
 0x223   :  { %1600 = vmatpush1.bf16.msra.mxu1 %v2908_v25  ;;  %v2919_v25 = vld [vmem:[#allocation8 + $0x14] ss:$8 sps:$4 sm:$0xff]  }
 0x224   :  { %1601 = vmatprep.subr.bf16.mxu1 %v2913_v39  ;;  %2275 = vmatprep.subr.bf16.mxu0 %v2919_v25  ;;  %v2949_v25 = vld [vmem:[#allocation8 + $0xb4] ss:$8 sps:$4 sm:$0xff]  }
 0x227   :  { %1602 = vmatpush1.bf16.msra.mxu1 %v2911_v31 }
 0x22a   :  { %1604 = vmatmul.mubr.bf16.vlgmr.msra.gmra.mrb[16].mxu1 %v3402_v54 }
 0x22b   :  { %1613 = vmatprep.mubr.bf16.mxu1 %v3410_v35 }
 0x232   :  { %1614 = vmatmul.mubr.bf16.gmra.mrb[20].mxu1 %v3417_v24 }
 0x27d   :  { %v1446_v26 = vpop.f32.mrb[8].mxu1 }
 0x27e   :  { %v1448_v46 = vpop.f32.mrb[9].mxu1 }
 0x27f   :  { %v1499_v40 = vpop.f32.mrb[8].mxu0  ;;  %v1450_v44 = vpop.f32.mrb[10].mxu1 }
 0x280   :  { %v1500_v47 = vadd.f32 %v1499_v40, %v1446_v26  ;;  %v1501_v41 = vpop.f32.mrb[9].mxu0  ;;  %v1452_v45 = vpop.f32.mrb[11].mxu1  ;;  %v2917_v26 = vld [vmem:[#allocation8 + $0x10] ss:$8 sps:$4 sm:$0xff]  }
 0x281   :  { %v1502_v50 = vadd.f32 %v1501_v41, %v1448_v46  ;;  %v1503_v51 = vpop.f32.mrb[10].mxu0  ;;  %2276 = vmatpush1.bf16.msra.mxu0 %v2917_v26  ;;  %v2950_v26 = vld [vmem:[#allocation8 + $0xc0] ss:$8 sps:$4 sm:$0xff]  }
 0x282   :  { %v1504_v0 = vadd.f32 %v1503_v51, %v1450_v44  ;;  %v1505_v55 = vpop.f32.mrb[11].mxu0 }
 0x283   :  { %v1506_v52 = vadd.f32 %v1505_v55, %v1452_v45  ;;  %v2920_v55 = vld [vmem:[#allocation8 + $0x20] ss:$8 sps:$4 sm:$0xff]  }
 0x284   :  { %v1628_v53 = vadd.f32 %v1504_v0, %v1500_v47 }
 0x285   :  { %v1637_v61 = vadd.f32 %v1506_v52, %v1502_v50  ;;  %v1456_v59 = vpop.f32.mrb[12].mxu1 }
 0x286   :  { %v1458_v54 = vpop.f32.mrb[13].mxu1 }
 0x287   :  { %v1509_v62 = vpop.f32.mrb[12].mxu0  ;;  %v1460_v35 = vpop.f32.mrb[14].mxu1 }
 0x288   :  { %v1510_v60 = vadd.f32 %v1509_v62, %v1456_v59  ;;  %v1511_v24 = vpop.f32.mrb[13].mxu0  ;;  %v1462_v42 = vpop.f32.mrb[15].mxu1  ;;  %v2925_v59 = vld [vmem:[#allocation8 + $0x34] ss:$8 sps:$4 sm:$0xff]   ;;  %v2923_v62 = vld [vmem:[#allocation8 + $0x30] ss:$8 sps:$4 sm:$0xff]  }
 0x289   :  { %v1512_v32 = vadd.f32 %v1511_v24, %v1458_v54  ;;  %v1513_v48 = vpop.f32.mrb[14].mxu0 }
 0x28a   :  { %v1629_v33 = vadd.f32 %v1628_v53, %v1510_v60  ;;  %v1514_v56 = vadd.f32 %v1513_v48, %v1460_v35  ;;  %v1515_v36 = vpop.f32.mrb[15].mxu0  ;;  %v2926_v48 = vld [vmem:[#allocation8 + $0x40] ss:$8 sps:$4 sm:$0xff]  }
 0x28b   :  { %v1638_v63 = vadd.f32 %v1637_v61, %v1512_v32  ;;  %v1516_v49 = vadd.f32 %v1515_v36, %v1462_v42  ;;  %v2928_v42 = vld [vmem:[#allocation8 + $0x44] ss:$8 sps:$4 sm:$0xff]  }
 0x28c   :  { %v1630_v37 = vadd.f32 %v1629_v33, %v1514_v56 }
 0x28d   :  { %v1639_v4 = vadd.f32 %v1638_v63, %v1516_v49  ;;  %v2931_v63 = vld [vmem:[#allocation8 + $0x54] ss:$8 sps:$4 sm:$0xff]  }
 0x28e   :  { %v1631_v6 = vrot.slane %v1630_v37, 4 }
 0x28f   :  { %v1640_v7 = vrot.slane %v1639_v4, 4 }
 0x290   :  { %v1632_v8 = vadd.f32 %v1631_v6, %v1630_v37  ;;  %v2929_v37 = vld [vmem:[#allocation8 + $0x50] ss:$8 sps:$4 sm:$0xff]  }
 0x291   :  { %v1641_v57 = vadd.f32 %v1640_v7, %v1639_v4 }
 0x292   :  { %v1633_v58 = vrot.slane %v1632_v8, 2 }
 0x293   :  { %v1642_v9 = vrot.slane %v1641_v57, 2 }
 0x294   :  { %v1634_v3 = vadd.f32 %v1633_v58, %v1632_v8  ;;  %v2934_v8 = vld [vmem:[#allocation8 + $0x64] ss:$8 sps:$4 sm:$0xff]   ;;  %v2932_v58 = vld [vmem:[#allocation8 + $0x60] ss:$8 sps:$4 sm:$0xff]  }
 0x295   :  { %v1643_v1 = vadd.f32 %v1642_v9, %v1641_v57 }
 0x296   :  { %v1635_v10 = vrot.slane %v1634_v3, 1 }
 0x297   :  { %v1644_v11 = vrot.slane %v1643_v1, 1 }
 0x298   :  { %v1636_v43 = vadd.f32 %v1635_v10, %v1634_v3  ;;  %v2935_v10 = vld [vmem:[#allocation8 + $0x70] ss:$8 sps:$4 sm:$0xff]  }
 0x299   :  { %v1645_v13 = vadd.f32 %v1644_v11, %v1643_v1  ;;  %v2937_v1 = vld [vmem:[#allocation8 + $0x74] ss:$8 sps:$4 sm:$0xff]   ;;  %v2940_v11 = vld [vmem:[#allocation8 + $0x84] ss:$8 sps:$4 sm:$0xff]  }
 0x29a   :  { %v1664_v14 = vmul.f32 0.03125, %v1636_v43  ;;  %v2938_v43 = vld [vmem:[#allocation8 + $0x80] ss:$8 sps:$4 sm:$0xff]  }
 0x29b   :  { %v1665_v2 = vmul.f32 0.03125, %v1645_v13  ;;  %v2943_v13 = vld [vmem:[#allocation8 + $0x94] ss:$8 sps:$4 sm:$0xff]  }
 0x29c   :  { %v3427_v20 = vsub.f32 %v1500_v47, %v1664_v14  ;;  %v3429_v21 = vsub.f32 %v1504_v0, %v1664_v14  ;;  %v3431_v22 = vsub.f32 %v1510_v60, %v1664_v14  ;;  %v3433_v19 = vsub.f32 %v1514_v56, %v1664_v14  ;;  %v2941_v14 = vld [vmem:[#allocation8 + $0x90] ss:$8 sps:$4 sm:$0xff]  }
 0x29d   :  { %v3435_v27 = vsub.f32 %v1502_v50, %v1665_v2  ;;  %v3437_v23 = vsub.f32 %v1506_v52, %v1665_v2  ;;  %v3439_v28 = vsub.f32 %v1512_v32, %v1665_v2  ;;  %v3441_v38 = vsub.f32 %v1516_v49, %v1665_v2  ;;  %v2922_v50 = vld [vmem:[#allocation8 + $0x24] ss:$8 sps:$4 sm:$0xff]  }
 0x29e   :  { %v1684_v29 = vmul.f32 %v3427_v20, %v3427_v20  ;;  %v1688_v30 = vmul.f32 %v3429_v21, %v3429_v21  ;;  %v1692_v46 = vmul.f32 %v3431_v22, %v3431_v22  ;;  %v1696_v41 = vmul.f32 %v3433_v19, %v3433_v19  ;;  %2277 = vmatprep.subr.bf16.mxu0 %v2922_v50  ;;  %v2964_v50 = vld [vmem:[#allocation8 + $0x104] ss:$8 sps:$4 sm:$0xff]  }
 0x29f   :  { %v1685_v39 = vmul.f32 %v3435_v27, %v3435_v27  ;;  %v1689_v31 = vmul.f32 %v3437_v23, %v3437_v23  ;;  %v1693_v44 = vmul.f32 %v3439_v28, %v3439_v28  ;;  %v1697_v51 = vmul.f32 %v3441_v38, %v3441_v38  ;;  %2278 = vmatpush1.bf16.msra.mxu0 %v2920_v55 }
 0x2a0   :  { %v1700_v40 = vadd.f32 %v1688_v30, %v1684_v29  ;;  %2279 = vmatprep.subr.bf16.mxu0 %v2925_v59  ;;  %v2946_v29 = vld [vmem:[#allocation8 + $0xa4] ss:$8 sps:$4 sm:$0xff]   ;;  %v2944_v30 = vld [vmem:[#allocation8 + $0xa0] ss:$8 sps:$4 sm:$0xff]  }
 0x2a1   :  { %v1709_v47 = vadd.f32 %v1689_v31, %v1685_v39  ;;  %v2947_v39 = vld [vmem:[#allocation8 + $0xb0] ss:$8 sps:$4 sm:$0xff]   ;;  %v2952_v31 = vld [vmem:[#allocation8 + $0xc4] ss:$8 sps:$4 sm:$0xff]  }
 0x2a2   :  { %v1701_v45 = vadd.f32 %v1700_v40, %v1692_v46  ;;  %v2953_v46 = vld [vmem:[#allocation8 + $0xd0] ss:$8 sps:$4 sm:$0xff]   ;;  %v2955_v40 = vld [vmem:[#allocation8 + $0xd4] ss:$8 sps:$4 sm:$0xff]  }
 0x2a3   :  { %v1710_v0 = vadd.f32 %v1709_v47, %v1693_v44  ;;  %2280 = vmatpush1.bf16.msra.mxu0 %v2923_v62  ;;  %v2958_v44 = vld [vmem:[#allocation8 + $0xe4] ss:$8 sps:$4 sm:$0xff]   ;;  %v2956_v47 = vld [vmem:[#allocation8 + $0xe0] ss:$8 sps:$4 sm:$0xff]  }
 0x2a4   :  { %v1702_v52 = vadd.f32 %v1701_v45, %v1696_v41  ;;  %2281 = vmatprep.subr.bf16.mxu0 %v2928_v42  ;;  %v2961_v41 = vld [vmem:[#allocation8 + $0xf4] ss:$8 sps:$4 sm:$0xff]   ;;  %v2959_v45 = vld [vmem:[#allocation8 + $0xf0] ss:$8 sps:$4 sm:$0xff]  }
 0x2a5   :  { %v1711_v53 = vadd.f32 %v1710_v0, %v1697_v51 }
 0x2a6   :  { %v1703_v61 = vrot.slane %v1702_v52, 4 }
 0x2a7   :  { %v1712_v54 = vrot.slane %v1711_v53, 4  ;;  %2282 = vmatpush1.bf16.msra.mxu0 %v2926_v48 }
 0x2a8   :  { %v1704_v35 = vadd.f32 %v1703_v61, %v1702_v52  ;;  %2283 = vmatprep.subr.bf16.mxu0 %v2931_v63 }
 0x2a9   :  { %v1713_v60 = vadd.f32 %v1712_v54, %v1711_v53 }
 0x2aa   :  { %v1705_v24 = vrot.slane %v1704_v35, 2 }
 0x2ab   :  { %v1714_v32 = vrot.slane %v1713_v60, 2  ;;  %2284 = vmatpush1.bf16.msra.mxu0 %v2929_v37 }
 0x2ac   :  { %v1706_v33 = vadd.f32 %v1705_v24, %v1704_v35  ;;  %2285 = vmatprep.subr.bf16.mxu0 %v2934_v8 }
 0x2ad   :  { %v1715_v56 = vadd.f32 %v1714_v32, %v1713_v60 }
 0x2ae   :  { %v1707_v36 = vrot.slane %v1706_v33, 1 }
 0x2af   :  { %v1716_v49 = vrot.slane %v1715_v56, 1  ;;  %2286 = vmatpush1.bf16.msra.mxu0 %v2932_v58 }
 0x2b0   :  { %v1708_v4 = vadd.f32 %v1707_v36, %v1706_v33  ;;  %2287 = vmatprep.subr.bf16.mxu0 %v2937_v1 }
 0x2b1   :  { %v1717_v6 = vadd.f32 %v1716_v49, %v1715_v56 }
 0x2b2   :  { %v1736_v7 = vmul.f32 0.03125, %v1708_v4 }
 0x2b3   :  { %v1737_v57 = vmul.f32 0.03125, %v1717_v6  ;;  %2288 = vmatpush1.bf16.msra.mxu0 %v2935_v10 }
 0x2b4   :  { %v1740_v9 = vadd.f32 1e-05, %v1736_v7  ;;  %2289 = vmatprep.subr.bf16.mxu0 %v2940_v11 }
 0x2b5   :  { %v1741_v3 = vadd.f32 1e-05, %v1737_v57 }
 0x2b6   :  { %3018 = vrsqrt.f32 %v1740_v9 }
 0x2b7   :  { %3020 = vrsqrt.f32 %v1741_v3  ;;  %2290 = vmatpush1.bf16.msra.mxu0 %v2938_v43 }
 0x2b8   :  { %2291 = vmatprep.subr.bf16.mxu0 %v2943_v13 }
 0x2bb   :  { %2292 = vmatpush1.bf16.msra.mxu0 %v2941_v14 }
 0x2bc   :  { %2293 = vmatprep.subr.bf16.mxu0 %v2946_v29 }
 0x2bf   :  { %2294 = vmatpush1.bf16.msra.mxu0 %v2944_v30 }
 0x2c0   :  { %v3459_v34 = vpop.eup %3018  ;;  %2295 = vmatprep.subr.bf16.mxu0 %v2949_v25 }
 0x2c1   :  { %v3461_v2 = vpop.eup %3020 }
 0x2c2   :  { %v1752_v18 = vcombine.low %v3459_v34, %v3461_v2 }
 0x2c3   :  { %2296 = vmatpush1.bf16.msra.mxu0 %v2947_v39 }
 0x2c4   :  { %2297 = vmatprep.subr.bf16.mxu0 %v2952_v31 }
 0x2c7   :  { %2298 = vmatpush1.bf16.msra.mxu0 %v2950_v26 }
 0x2c8   :  { %2299 = vmatprep.subr.bf16.mxu0 %v2955_v40 }
 0x2cb   :  { %2300 = vmatpush1.bf16.msra.mxu0 %v2953_v46 }
 0x2cc   :  { %2301 = vmatprep.subr.bf16.mxu0 %v2958_v44 }
 0x2cf   :  { %2302 = vmatpush1.bf16.msra.mxu0 %v2956_v47 }
 0x2d0   :  { %2303 = vmatprep.subr.bf16.mxu0 %v2961_v41 }
 0x2d3   :  { %2304 = vmatpush1.bf16.msra.mxu0 %v2959_v45 }
 0x2d4   :  { %2326 = vmatprep.subr.bf16.mxu0 %v2964_v50 }
 0x2fd   :  { %v1605_v51 = vpop.f32.mrb[16].mxu1 }
 0x2fe   :  { %v1607_v0 = vpop.f32.mrb[17].mxu1 }
 0x2ff   :  { %v1609_v55 = vpop.f32.mrb[18].mxu1 }
 0x300   :  { %v1646_v52 = vadd.f32 %v1609_v55, %v1605_v51  ;;  %v1611_v53 = vpop.f32.mrb[19].mxu1 }
 0x301   :  { %v1655_v61 = vadd.f32 %v1611_v53, %v1607_v0 }
 0x305   :  { %v1615_v59 = vpop.f32.mrb[20].mxu1 }
 0x306   :  { %v1647_v54 = vadd.f32 %v1646_v52, %v1615_v59  ;;  %v1617_v62 = vpop.f32.mrb[21].mxu1 }
 0x307   :  { %v1656_v35 = vadd.f32 %v1655_v61, %v1617_v62  ;;  %v1619_v60 = vpop.f32.mrb[22].mxu1 }
 0x308   :  { %v1648_v24 = vadd.f32 %v1647_v54, %v1619_v60  ;;  %v1621_v42 = vpop.f32.mrb[23].mxu1 }
 0x309   :  { %v1657_v32 = vadd.f32 %v1656_v35, %v1621_v42 }
 0x30a   :  { %v1649_v48 = vrot.slane %v1648_v24, 4 }
 0x30b   :  { %v1658_v33 = vrot.slane %v1657_v32, 4 }
 0x30c   :  { %v1650_v56 = vadd.f32 %v1649_v48, %v1648_v24 }
 0x30d   :  { %v1659_v36 = vadd.f32 %v1658_v33, %v1657_v32 }
 0x30e   :  { %v1651_v63 = vrot.slane %v1650_v56, 2 }
 0x30f   :  { %v1660_v49 = vrot.slane %v1659_v36, 2 }
 0x310   :  { %v1652_v37 = vadd.f32 %v1651_v63, %v1650_v56 }
 0x311   :  { %v1661_v4 = vadd.f32 %v1660_v49, %v1659_v36 }
 0x312   :  { %v1653_v6 = vrot.slane %v1652_v37, 1 }
 0x313   :  { %v1662_v7 = vrot.slane %v1661_v4, 1 }
 0x314   :  { %v1654_v8 = vadd.f32 %v1653_v6, %v1652_v37 }
 0x315   :  { %v1663_v57 = vadd.f32 %v1662_v7, %v1661_v4  ;;  %v1760_v4 = vrot.slane %v1752_v18, %v3362_v5 }
 0x316   :  { %v1666_v58 = vmul.f32 0.03125, %v1654_v8  ;;  %v1625_v8 = vld [vmem:[#allocation10 + $0x2] ss:$8 sm:$0xf] }
 0x317   :  { %v1667_v9 = vmul.f32 0.03125, %v1663_v57  ;;  %v1627_v57 = vld [vmem:[#allocation10 + $0x3] ss:$8 sm:$0xf] }
 0x318   :  { %v3465_v3 = vsub.f32 %v1605_v51, %v1666_v58  ;;  %v3467_v1 = vsub.f32 %v1609_v55, %v1666_v58  ;;  %v3469_v10 = vsub.f32 %v1615_v59, %v1666_v58  ;;  %v3471_v11 = vsub.f32 %v1619_v60, %v1666_v58 }
 0x319   :  { %v3473_v43 = vsub.f32 %v1607_v0, %v1667_v9  ;;  %v3475_v13 = vsub.f32 %v1611_v53, %v1667_v9  ;;  %v3477_v14 = vsub.f32 %v1617_v62, %v1667_v9  ;;  %v1683_v29 = vsub.f32 %v1621_v42, %v1667_v9 }
 0x31a   :  { %v1686_v30 = vmul.f32 %v3465_v3, %v3465_v3  ;;  %v1690_v25 = vmul.f32 %v3467_v1, %v3467_v1  ;;  %v1694_v26 = vmul.f32 %v3469_v10, %v3469_v10  ;;  %v1698_v47 = vmul.f32 %v3471_v11, %v3471_v11 }
 0x31b   :  { %v1687_v39 = vmul.f32 %v3473_v43, %v3473_v43  ;;  %v1691_v31 = vmul.f32 %v3475_v13, %v3475_v13  ;;  %v1695_v40 = vmul.f32 %v3477_v14, %v3477_v14  ;;  %v1699_v45 = vmul.f32 %v1683_v29, %v1683_v29 }
 0x31c   :  { %v1718_v46 = vadd.f32 %v1690_v25, %v1686_v30  ;;  %v1819_v30 = vrot.slane %v1627_v57, %v3366_v12  ;;  %v1831_v25 = vrot.slane %v1627_v57, %v3371_v16  ;;  %v1827_v2 = vrot.slane %v1627_v57, %v3369_v15 }
 0x31d   :  { %v1727_v44 = vadd.f32 %v1691_v31, %v1687_v39 }
 0x31e   :  { %v1719_v41 = vadd.f32 %v1718_v46, %v1694_v26  ;;  %v1823_v26 = vrot.slane %v1627_v57, %v3373_v17  ;;  %v2970_v57 = vld [vmem:[#allocation8 + $0x124] ss:$8 sps:$4 sm:$0xff]  }
 0x31f   :  { %v1728_v50 = vadd.f32 %v1727_v44, %v1695_v40 }
 0x320   :  { %v1720_v51 = vadd.f32 %v1719_v41, %v1698_v47 }
 0x321   :  { %v1729_v0 = vadd.f32 %v1728_v50, %v1699_v45 }
 0x322   :  { %v1721_v55 = vrot.slane %v1720_v51, 4 }
 0x323   :  { %v1730_v52 = vrot.slane %v1729_v0, 4 }
 0x324   :  { %v1722_v53 = vadd.f32 %v1721_v55, %v1720_v51 }
 0x325   :  { %v1731_v61 = vadd.f32 %v1730_v52, %v1729_v0 }
 0x326   :  { %v1723_v59 = vrot.slane %v1722_v53, 2 }
 0x327   :  { %v1732_v54 = vrot.slane %v1731_v61, 2 }
 0x328   :  { %v1724_v62 = vadd.f32 %v1723_v59, %v1722_v53 }
 0x329   :  { %v1733_v35 = vadd.f32 %v1732_v54, %v1731_v61 }
 0x32a   :  { %v1725_v60 = vrot.slane %v1724_v62, 1 }
 0x32b   :  { %v1734_v24 = vrot.slane %v1733_v35, 1 }
 0x32c   :  { %v1726_v42 = vadd.f32 %v1725_v60, %v1724_v62  ;;  %v2962_v62 = vld [vmem:[#allocation8 + $0x100] ss:$8 sps:$4 sm:$0xff]  }
 0x32d   :  { %v1735_v32 = vadd.f32 %v1734_v24, %v1733_v35 }
 0x32e   :  { %v1738_v48 = vmul.f32 0.03125, %v1726_v42 }
 0x32f   :  { %v1739_v33 = vmul.f32 0.03125, %v1735_v32  ;;  %v2967_v32 = vld [vmem:[#allocation8 + $0x114] ss:$8 sps:$4 sm:$0xff]  }
 0x330   :  { %v1742_v56 = vadd.f32 1e-05, %v1738_v48 }
 0x331   :  { %v1743_v36 = vadd.f32 1e-05, %v1739_v33 }
 0x332   :  { %3022 = vrsqrt.f32 %v1742_v56 }
 0x333   :  { %3024 = vrsqrt.f32 %v1743_v36 }
 0x33c   :  { %v3023_v63 = vpop.eup %3022 }
 0x33d   :  { %v3025_v49 = vpop.eup %3024 }
 0x33e   :  { %v1753_v37 = vcombine.low %v3023_v63, %v3025_v49 }
 0x340   :  { %v1767_v6 = vrot.slane %v1753_v37, %v3362_v5 }
 0x342   :  { %v1768_v7 = vcombine.low %v1760_v4, %v1767_v6  ;;  %v2965_v4 = vld [vmem:[#allocation8 + $0x110] ss:$8 sps:$4 sm:$0xff]  }
 0x344   :  { %v1775_v58 = vrot.slane %v1768_v7, %v3362_v5 }
 0x346   :  { %v1777_v9 = vmul.f32 %v1775_v58, %v1625_v8 }
 0x348   :  { %v1794_v39 = vrot.slane %v1777_v9, %v3371_v16  ;;  %v1786_v31 = vrot.slane %v1777_v9, %v3373_v17  ;;  %v1782_v34 = vrot.slane %v1777_v9, %v3366_v12  ;;  %v1790_v18 = vrot.slane %v1777_v9, %v3369_v15 }
 0x34a   :  { %v1814_v46 = vmul.f32 %v1794_v39, %v1683_v29  ;;  %v1800_v5 = vmul.f32 %v1786_v31, %v3435_v27  ;;  %v1804_v40 = vmul.f32 %v1786_v31, %v3437_v23  ;;  %v1799_v44 = vmul.f32 %v1782_v34, %v3427_v20 }
 0x34b   :  { %v1803_v47 = vmul.f32 %v1782_v34, %v3429_v21  ;;  %v1808_v16 = vmul.f32 %v1786_v31, %v3439_v28  ;;  %v1812_v41 = vmul.f32 %v1786_v31, %v3441_v38  ;;  %v1807_v45 = vmul.f32 %v1782_v34, %v3431_v22 }
 0x34c   :  { %v1851_v50 = vadd.f32 %v1831_v25, %v1814_v46  ;;  %v1837_v51 = vadd.f32 %v1823_v26, %v1800_v5  ;;  %v1841_v0 = vadd.f32 %v1823_v26, %v1804_v40  ;;  %v1836_v55 = vadd.f32 %v1819_v30, %v1799_v44  ;;  %v2971_v40 = vld [vmem:[#allocation8 + $0x130] ss:$8 sps:$4 sm:$0xff]   ;;  %v2979_v44 = vld [vmem:[#allocation8 + $0x154] ss:$8 sps:$4 sm:$0xff]  }
 0x34d   :  { %v1840_v15 = vadd.f32 %v1819_v30, %v1803_v47  ;;  %v1845_v29 = vadd.f32 %v1823_v26, %v1808_v16  ;;  %v1849_v52 = vadd.f32 %v1823_v26, %v1812_v41  ;;  %v1811_v27 = vmul.f32 %v1782_v34, %v3433_v19  ;;  %v2977_v47 = vld [vmem:[#allocation8 + $0x150] ss:$8 sps:$4 sm:$0xff]   ;;  %v2982_v16 = vld [vmem:[#allocation8 + $0x164] ss:$8 sps:$4 sm:$0xff]   ;;  %v2980_v41 = vld [vmem:[#allocation8 + $0x160] ss:$8 sps:$4 sm:$0xff]  }
 0x34e   :  { %v1867_v23 = vmax.f32 %v1851_v50, 0.0  ;;  %v1853_v53 = vmax.f32 %v1837_v51, 0.0  ;;  %v1857_v20 = vmax.f32 %v1841_v0, 0.0  ;;  %v1852_v61 = vmax.f32 %v1836_v55, 0.0  ;;  %v2983_v50 = vld [vmem:[#allocation8 + $0x170] ss:$8 sps:$4 sm:$0xff]  }
 0x34f   :  { %v1856_v21 = vmax.f32 %v1840_v15, 0.0  ;;  %v1861_v59 = vmax.f32 %v1845_v29, 0.0  ;;  %v1865_v28 = vmax.f32 %v1849_v52, 0.0  ;;  %v1844_v54 = vadd.f32 %v1819_v30, %v1807_v45  ;;  %v2985_v45 = vld [vmem:[#allocation8 + $0x174] ss:$8 sps:$4 sm:$0xff]  }
 0x350   :  { %v1869_v38 = vpack.c.bf16 %v1857_v20, %v1853_v53  ;;  %v1848_v22 = vadd.f32 %v1819_v30, %v1811_v27  ;;  %v1802_v35 = vmul.f32 %v1794_v39, %v3473_v43  ;;  %v1806_v60 = vmul.f32 %v1794_v39, %v3475_v13  ;;  %v2988_v51 = vld [vmem:[#allocation8 + $0x184] ss:$8 sps:$4 sm:$0xff]   ;;  %v2986_v0 = vld [vmem:[#allocation8 + $0x180] ss:$8 sps:$4 sm:$0xff]   ;;  %v2991_v55 = vld [vmem:[#allocation8 + $0x194] ss:$8 sps:$4 sm:$0xff]  }
 0x351   :  { %v1868_v24 = vpack.c.bf16 %v1856_v21, %v1852_v61  ;;  %v1873_v42 = vpack.c.bf16 %v1865_v28, %v1861_v59  ;;  %v1860_v48 = vmax.f32 %v1844_v54, 0.0  ;;  %v1801_v19 = vmul.f32 %v1790_v18, %v3465_v3  ;;  %v2989_v15 = vld [vmem:[#allocation8 + $0x190] ss:$8 sps:$4 sm:$0xff]   ;;  %v2994_v29 = vld [vmem:[#allocation8 + $0x1a4] ss:$8 sps:$4 sm:$0xff]  }
 0x352   :  { %2305 = vmatprep.mubr.bf16.mxu0 %v1869_v38  ;;  %v1864_v33 = vmax.f32 %v1848_v22, 0.0  ;;  %v1839_v56 = vadd.f32 %v1831_v25, %v1802_v35  ;;  %v1843_v36 = vadd.f32 %v1831_v25, %v1806_v60  ;;  %v1805_v63 = vmul.f32 %v1790_v18, %v3467_v1  ;;  %v2992_v52 = vld [vmem:[#allocation8 + $0x1a0] ss:$8 sps:$4 sm:$0xff]   ;;  %v2997_v27 = vld [vmem:[#allocation8 + $0x1b4] ss:$8 sps:$4 sm:$0xff]  }
 0x353   :  { %2306 = vmatmul.mubr.bf16.vlgmr.msra.gmra.mrb[16].mxu0 %v1868_v24  ;;  %v1838_v49 = vadd.f32 %v1827_v2, %v1801_v19  ;;  %v1810_v37 = vmul.f32 %v1794_v39, %v3477_v14  ;;  %v1809_v43 = vmul.f32 %v1790_v18, %v3469_v10  ;;  %v1813_v13 = vmul.f32 %v1790_v18, %v3471_v11  ;;  %v2968_v11 = vld [vmem:[#allocation8 + $0x120] ss:$8 sps:$4 sm:$0xff]   ;;  %v2973_v18 = vld [vmem:[#allocation8 + $0x134] ss:$8 sps:$4 sm:$0xff]   ;;  %v3000_v53 = vld [vmem:[#allocation8 + $0x1c4] ss:$8 sps:$4 sm:$0xff]  }
 0x354   :  { %2327 = vmatpush1.bf16.msra.mxu0 %v2962_v62  ;;  %2315 = vmatprep.mubr.bf16.mxu0 %v1873_v42  ;;  %v1872_v6 = vpack.c.bf16 %v1864_v33, %v1860_v48  ;;  %v1855_v7 = vmax.f32 %v1839_v56, 0.0  ;;  %v1859_v3 = vmax.f32 %v1843_v36, 0.0  ;;  %v1842_v8 = vadd.f32 %v1827_v2, %v1805_v63  ;;  %v2998_v20 = vld [vmem:[#allocation8 + $0x1c0] ss:$8 sps:$4 sm:$0xff]   ;;  %v3003_v61 = vld [vmem:[#allocation8 + $0x1d4] ss:$8 sps:$4 sm:$0xff]  }
 0x355   :  { %2328 = vmatprep.subr.bf16.mxu0 %v2967_v32  ;;  %v1854_v58 = vmax.f32 %v1838_v49, 0.0  ;;  %v1847_v9 = vadd.f32 %v1831_v25, %v1810_v37  ;;  %v1846_v1 = vadd.f32 %v1827_v2, %v1809_v43  ;;  %v1850_v30 = vadd.f32 %v1827_v2, %v1813_v13  ;;  %v2976_v25 = vld [vmem:[#allocation8 + $0x144] ss:$8 sps:$4 sm:$0xff]   ;;  %v2974_v2 = vld [vmem:[#allocation8 + $0x140] ss:$8 sps:$4 sm:$0xff]  }
 0x356   :  { %v1871_v31 = vpack.c.bf16 %v1859_v3, %v1855_v7  ;;  %v1858_v26 = vmax.f32 %v1842_v8, 0.0  ;;  %v3001_v21 = vld [vmem:[#allocation8 + $0x1d0] ss:$8 sps:$4 sm:$0xff]   ;;  %v3006_v59 = vld [vmem:[#allocation8 + $0x1e4] ss:$8 sps:$4 sm:$0xff]  }
 0x357   :  { %v1863_v14 = vmax.f32 %v1847_v9, 0.0  ;;  %v1862_v39 = vmax.f32 %v1846_v1, 0.0  ;;  %v1866_v10 = vmax.f32 %v1850_v30, 0.0  ;;  %v3004_v28 = vld [vmem:[#allocation8 + $0x1e0] ss:$8 sps:$4 sm:$0xff]  }
 0x358   :  { %2329 = vmatpush1.bf16.msra.mxu0 %v2965_v4  ;;  %v1870_v34 = vpack.c.bf16 %v1858_v26, %v1854_v58  ;;  %v3009_v54 = vld [vmem:[#allocation8 + $0x1f4] ss:$8 sps:$4 sm:$0xff]   ;;  %v3007_v38 = vld [vmem:[#allocation8 + $0x1f0] ss:$8 sps:$4 sm:$0xff]  }
 0x359   :  { %2330 = vmatprep.subr.bf16.mxu0 %v2970_v57  ;;  %v1875_v46 = vpack.c.bf16 %v1867_v23, %v1863_v14  ;;  %v1874_v5 = vpack.c.bf16 %v1866_v10, %v1862_v39  ;;  %v2995_v23 = vld [vmem:[#allocation8 + $0x1b0] ss:$8 sps:$4 sm:$0xff]   ;;  %v1941_v62 = vld [vmem:[#allocation10 + $0x4] ss:$8 sm:$0x3] }
 0x35a   :  { %v1946_v22 = vrot.slane %v1941_v62, %v3366_v12  ;;  %v1950_v35 = vrot.slane %v1941_v62, %v3373_v17 }
 0x35b   :  { %2316 = vmatmul.mubr.bf16.gmra.mrb[20].mxu0 %v1872_v6 }
 0x35c   :  { %2331 = vmatpush1.bf16.msra.mxu0 %v2968_v11  ;;  %2358 = vmatprep.mubr.bf16.mxu0 %v1871_v31 }
 0x35d   :  { %2332 = vmatprep.subr.bf16.mxu0 %v2973_v18 }
 0x360   :  { %2333 = vmatpush1.bf16.msra.mxu0 %v2971_v40 }
 0x361   :  { %2334 = vmatprep.subr.bf16.mxu0 %v2976_v25 }
 0x364   :  { %2335 = vmatpush1.bf16.msra.mxu0 %v2974_v2 }
 0x365   :  { %2336 = vmatprep.subr.bf16.mxu0 %v2979_v44 }
 0x368   :  { %2337 = vmatpush1.bf16.msra.mxu0 %v2977_v47 }
 0x369   :  { %2338 = vmatprep.subr.bf16.mxu0 %v2982_v16 }
 0x36c   :  { %2339 = vmatpush1.bf16.msra.mxu0 %v2980_v41 }
 0x36d   :  { %2340 = vmatprep.subr.bf16.mxu0 %v2985_v45 }
 0x370   :  { %2341 = vmatpush1.bf16.msra.mxu0 %v2983_v50 }
 0x371   :  { %2342 = vmatprep.subr.bf16.mxu0 %v2988_v51 }
 0x374   :  { %2343 = vmatpush1.bf16.msra.mxu0 %v2986_v0 }
 0x375   :  { %2344 = vmatprep.subr.bf16.mxu0 %v2991_v55 }
 0x378   :  { %2345 = vmatpush1.bf16.msra.mxu0 %v2989_v15 }
 0x379   :  { %2346 = vmatprep.subr.bf16.mxu0 %v2994_v29 }
 0x37c   :  { %2347 = vmatpush1.bf16.msra.mxu0 %v2992_v52 }
 0x37d   :  { %2348 = vmatprep.subr.bf16.mxu0 %v2997_v27 }
 0x380   :  { %2349 = vmatpush1.bf16.msra.mxu0 %v2995_v23 }
 0x381   :  { %2350 = vmatprep.subr.bf16.mxu0 %v3000_v53 }
 0x384   :  { %2351 = vmatpush1.bf16.msra.mxu0 %v2998_v20 }
 0x385   :  { %2352 = vmatprep.subr.bf16.mxu0 %v3003_v61 }
 0x388   :  { %2353 = vmatpush1.bf16.msra.mxu0 %v3001_v21 }
 0x389   :  { %2354 = vmatprep.subr.bf16.mxu0 %v3006_v59 }
 0x38c   :  { %2355 = vmatpush1.bf16.msra.mxu0 %v3004_v28 }
 0x38d   :  { %2356 = vmatprep.subr.bf16.mxu0 %v3009_v54 }
 0x390   :  { %2357 = vmatpush1.bf16.msra.mxu0 %v3007_v38 }
 0x393   :  { %2359 = vmatmul.mubr.bf16.vlgmr.msra.gmra.mrb[16].mxu0 %v1870_v34 }
 0x394   :  { %2368 = vmatprep.mubr.bf16.mxu0 %v1875_v46 }
 0x39b   :  { %2369 = vmatmul.mubr.bf16.gmra.mrb[20].mxu0 %v1874_v5 }
 0x466   :  { %v2360_v60 = vpop.f32.mrb[16].mxu0 }
 0x467   :  { %v2638_v24 = vadd.f32 %v2360_v60, %v1946_v22  ;;  %v2362_v42 = vpop.f32.mrb[17].mxu0 }
 0x468   :  { %v2639_v32 = vadd.f32 %v2362_v42, %v1950_v35  ;;  %v2364_v48 = vpop.f32.mrb[18].mxu0 }
 0x469   :  { %2379 = vst [vmem:[#allocation11] sm:$0xff] %v2638_v24  ;;  %v2640_v19 = vadd.f32 %v2364_v48, %v1946_v22  ;;  %v2366_v33 = vpop.f32.mrb[19].mxu0 }
 0x46a   :  { %2380 = vst [vmem:[#allocation11 + $0x8] sm:$0xff] %v2639_v32  ;;  %v2641_v56 = vadd.f32 %v2366_v33, %v1950_v35 }
 0x46b   :  { %2381 = vst [vmem:[#allocation11 + $0x10] sm:$0xff] %v2640_v19 }
 0x46c   :  { %2382 = vst [vmem:[#allocation11 + $0x18] sm:$0xff] %v2641_v56 }
 0x46e   :  { %v2370_v36 = vpop.f32.mrb[20].mxu0 }
 0x46f   :  { %v2642_v63 = vadd.f32 %v2370_v36, %v1946_v22  ;;  %v2372_v49 = vpop.f32.mrb[21].mxu0 }
 0x470   :  { %v2643_v12 = vadd.f32 %v2372_v49, %v1950_v35  ;;  %v2374_v37 = vpop.f32.mrb[22].mxu0 }
 0x471   :  { %2383 = vst [vmem:[#allocation11 + $0x20] sm:$0xff] %v2642_v63  ;;  %v2644_v17 = vadd.f32 %v2374_v37, %v1946_v22  ;;  %v2376_v43 = vpop.f32.mrb[23].mxu0 }
 0x472   :  { %2384 = vst [vmem:[#allocation11 + $0x28] sm:$0xff] %v2643_v12  ;;  %v2645_v13 = vadd.f32 %v2376_v43, %v1950_v35 }
 0x473   :  { %2385 = vst [vmem:[#allocation11 + $0x30] sm:$0xff] %v2644_v17 }
 0x474   :  { %2386 = vst [vmem:[#allocation11 + $0x38] sm:$0xff] %v2645_v13 }
 0x475   :  { %3147 = shalt.err (!%p3144_p2)
}
 0x476   :  { %s3148_s9 = scalar_lea.hbm %s3544_s5, 1024 }
 0x477   :  { %p3149_p3 = scmp.ne.s32.totalorder %s3544_s5, %s3148_s9  ;;  %p3152_p4 = scmp.lt.u32.totalorder %s3148_s9, %s3544_s5 }
 0x479   :  { %p3154_p5 = pnand %p3152_p4, %p3149_p3 }
 0x47b   :  { %3157 = shalt.err (!%p3154_p5)
}
 0x47c   :  { %2398 = dma.vmem_to_hbm [thread:$0]  %s2393_s6, 1024, %s3544_s5, [#allocation4], %s3167_s28, %s3167_s28, %s3168_s29  }
 0x47d   :  { %3164 = dma.done.wait [#allocation4], 1024  }
 0x47e   :  { %3165 = vsyncadd [#allocation4], 4294966272 }
 0x47f   :  { %2402 = vsyncpa [#allocation3], 1 }
 0x480   :  { %2403 = vsyncpa [#allocation6], 1 }
 0x481   :  { %2404 = vsyncpa [#allocation9], 1 }
 0x482   :  { %2405 = vsyncpa [#allocation4], 1 }

</bundles_post_ra>
